<compile_context>
chip_gen: v5e
topology: v5e:2x2
jax: 0.10.0
libtpu: 0.0.40
codegen_flags: <defaults>
</compile_context>

<pallas_src>
import functools

import jax
import jax.numpy as jnp
from jax.experimental import pallas as pl
from jax.experimental.pallas import tpu as pltpu

NEG_INF = -1e30  # masks padded head lanes out of the softmax


def _round_up(n, m):
    return ((n + m - 1) // m) * m


def _row_tiling(m, target):
    """Return (padded_rows, row_tile) with row_tile | padded_rows, row_tile % 8 == 0."""
    if m <= target:
        m_pad = _round_up(m, 8)
        return m_pad, m_pad
    m_pad = _round_up(m, target)
    return m_pad, target


def _bf16_dot(x, w_ref):
    # bf16 x bf16 MXU matmul with f32 accumulation.
    return jnp.dot(x.astype(jnp.bfloat16), w_ref[...],
                   preferred_element_type=jnp.float32)


# ----------------------------------------------------------------------------
# Kernel 1: batched, parallel trunk  (fc1..fc8 + GRU input projection x @ W_ih)
# ----------------------------------------------------------------------------
def trunk_kernel(x_ref, w1, w2, w3, w4, w5, w6, w7, w8, wih, gi_ref):
    x = x_ref[...]
    for w in (w1, w2, w3, w4, w5, w6, w7):
        x = jnp.maximum(_bf16_dot(x, w), 0.0)     # fc1..fc7 + ReLU (all biases == 0)
    x = _bf16_dot(x, w8)                          # fc8: no activation
    gi_ref[...] = _bf16_dot(x, wih)               # GRU input-gate pre-activations


# ----------------------------------------------------------------------------
# Kernel 2: serial GRU recurrence, TS timesteps per grid step
# ----------------------------------------------------------------------------
def gru_kernel(gi_ref, h0_ref, whh_ref, grux_ref, h_scr):
    @pl.when(pl.program_id(0) == 0)
    def _():
        h_scr[...] = h0_ref[...]                  # seed the recurrent carry

    h = h_scr[...]
    g = h.shape[-1]
    ts_block = gi_ref.shape[0]                    # static timestep block
    for ts in range(ts_block):                    # static unroll over the block
        gi = gi_ref[ts]                           # (B, 3G), computed in the trunk pass
        gh = _bf16_dot(h, whh_ref)                # (B, 3G); bias_hh == 0
        r = jax.nn.sigmoid(gi[:, 0:g] + gh[:, 0:g])
        z = jax.nn.sigmoid(gi[:, g:2 * g] + gh[:, g:2 * g])
        n = jnp.tanh(gi[:, 2 * g:3 * g] + r * gh[:, 2 * g:3 * g])
        h = (1.0 - z) * n + z * h
        grux_ref[ts] = h                          # emit grux for every timestep
    h_scr[...] = h                                # carry to the next grid step


# ----------------------------------------------------------------------------
# Kernel 3: batched, parallel head  (fc9 -> fc10_mean -> softmax)
# ----------------------------------------------------------------------------
def head_kernel(x_ref, w9, w10m, probs_ref, *, is_weight_size):
    y = jnp.maximum(_bf16_dot(x_ref[...], w9), 0.0)
    logits = _bf16_dot(y, w10m)                   # lane-padded to multiple of 128
    lane = jax.lax.broadcasted_iota(jnp.int32, logits.shape, dimension=1)
    logits = jnp.where(lane < is_weight_size, logits, NEG_INF)
    m = jnp.max(logits, axis=-1, keepdims=True)
    e = jnp.exp(logits - m)
    probs_ref[...] = e / jnp.sum(e, axis=-1, keepdims=True)   # exact normalization


# ----------------------------------------------------------------------------
# Parameter initialization (deterministic, mirrors the PyTorch __init__)
# ----------------------------------------------------------------------------
def normalized_columns_initializer(key, size, std=1.0):
    out = jax.random.normal(key, size, dtype=jnp.float32)
    out = out * std / jnp.sqrt(jnp.sum(out ** 2, axis=0, keepdims=True))
    return out


def init_attention_net_params(key, input_size, is_weight_size, gru_size):
    # All Linear / GRU biases are set to 0 in the PyTorch __init__, so no bias
    # tensors are materialized here.  fc10_std is never used in forward -> omitted.
    head_pad = _round_up(is_weight_size, 128)
    sizes = [
        (64, input_size), (64, 64), (128, 64), (128, 128),
        (256, 128), (256, 256), (512, 256), (gru_size, 512),
    ]
    keys = jax.random.split(key, 12)
    params = {}
    for idx, (o, i) in enumerate(sizes, start=1):          # fc1..fc8, (in, out) bf16
        w = normalized_columns_initializer(keys[idx - 1], (o, i), 0.5)
        params[f"w{idx}"] = w.T.astype(jnp.bfloat16)
    k = 1.0 / jnp.sqrt(jnp.float32(gru_size))               # PyTorch GRUCell default
    wih = jax.random.uniform(keys[8], (3 * gru_size, gru_size), jnp.float32, -k, k)
    whh = jax.random.uniform(keys[9], (3 * gru_size, gru_size), jnp.float32, -k, k)
    params["wih"] = wih.T.astype(jnp.bfloat16)               # (gru, 3*gru)
    params["whh"] = whh.T.astype(jnp.bfloat16)               # (gru, 3*gru)
    w9 = normalized_columns_initializer(keys[10], (512, gru_size), 0.5)
    params["w9"] = w9.T.astype(jnp.bfloat16)
    w10m = normalized_columns_initializer(keys[11], (is_weight_size, 512), 0.5)
    w10m_pad = jnp.zeros((512, head_pad), jnp.float32).at[:, :is_weight_size].set(w10m.T)
    params["w10m"] = w10m_pad.astype(jnp.bfloat16)
    return params


# ----------------------------------------------------------------------------
# pallas_call wrappers
# ----------------------------------------------------------------------------
_TRUNK_WEIGHTS = ["w1", "w2", "w3", "w4", "w5", "w6", "w7", "w8", "wih"]


def _const_spec(shape):
    nd = len(shape)
    return pl.BlockSpec(shape, lambda i: (0,) * nd)          # VMEM-resident block


def _trunk_pass(params, x_rows, row_tile):
    m_pad, din = x_rows.shape
    ws = [params[n] for n in _TRUNK_WEIGHTS]
    g3 = params["wih"].shape[1]
    return pl.pallas_call(
        trunk_kernel,
        grid=(m_pad // row_tile,),
        in_specs=[pl.BlockSpec((row_tile, din), lambda i: (i, 0))]
                 + [_const_spec(w.shape) for w in ws],
        out_specs=pl.BlockSpec((row_tile, g3), lambda i: (i, 0)),
        out_shape=jax.ShapeDtypeStruct((m_pad, g3), jnp.float32),
        compiler_params=pltpu.CompilerParams(dimension_semantics=("parallel",)),
    )(x_rows, *ws)


def _gru_pass(params, gi_seq, h0, ts):
    t_pad, b, g3 = gi_seq.shape
    g = h0.shape[1]
    return pl.pallas_call(
        gru_kernel,
        grid=(t_pad // ts,),
        in_specs=[pl.BlockSpec((ts, b, g3), lambda t: (t, 0, 0)),   # streamed gi
                  pl.BlockSpec((b, g), lambda t: (0, 0)),           # h0 (resident)
                  _const_spec(params["whh"].shape)],                # W_hh (resident)
        out_specs=pl.BlockSpec((ts, b, g), lambda t: (t, 0, 0)),    # grux per step
        out_shape=jax.ShapeDtypeStruct((t_pad, b, g), jnp.float32),
        scratch_shapes=[pltpu.VMEM((b, g), jnp.float32)],           # recurrent carry
        compiler_params=pltpu.CompilerParams(dimension_semantics=("arbitrary",)),
    )(gi_seq, h0, params["whh"])


def _head_pass(params, g_rows, row_tile, is_weight_size):
    m_pad, g = g_rows.shape
    head_pad = params["w10m"].shape[1]
    return pl.pallas_call(
        functools.partial(head_kernel, is_weight_size=is_weight_size),
        grid=(m_pad // row_tile,),
        in_specs=[pl.BlockSpec((row_tile, g), lambda i: (i, 0)),
                  _const_spec(params["w9"].shape),
                  _const_spec(params["w10m"].shape)],
        out_specs=pl.BlockSpec((row_tile, head_pad), lambda i: (i, 0)),
        out_shape=jax.ShapeDtypeStruct((m_pad, head_pad), jnp.float32),
        compiler_params=pltpu.CompilerParams(dimension_semantics=("parallel",)),
    )(g_rows, params["w9"], params["w10m"])


@functools.partial(jax.jit, static_argnames=("is_weight_size", "ts", "row_tile"))
def attention_net_forward_seq(params, data_seq, h0, *, is_weight_size, ts=4, row_tile=256):
    """Run T recurrent steps: parallel trunk pass -> serial GRU -> parallel head pass."""
    t, b, din = data_seq.shape
    g = h0.shape[1]
    head_pad = params["w10m"].shape[1]

    t_pad = _round_up(t, ts)
    if t_pad > t:                                  # pad trailing timesteps (discarded)
        data_seq = jnp.pad(data_seq, ((0, t_pad - t), (0, 0), (0, 0)))
    m = t_pad * b
    m_pad, tm = _row_tiling(m, row_tile)

    # --- pass 1: batched trunk over all T*B rows ------------------------------
    x_rows = data_seq.reshape(m, din)
    if m_pad > m:
        x_rows = jnp.pad(x_rows, ((0, m_pad - m), (0, 0)))
    gi_rows = _trunk_pass(params, x_rows, tm)                  # (m_pad, 3G)
    gi_seq = gi_rows[:m].reshape(t_pad, b, 3 * g)

    # --- pass 2: serial GRU recurrence, TS steps per grid iteration -----------
    grux_seq = _gru_pass(params, gi_seq, h0, ts)               # (t_pad, B, G)

    # --- pass 3: batched head over all T*B rows -------------------------------
    g_rows = grux_seq.reshape(m, g)
    if m_pad > m:
        g_rows = jnp.pad(g_rows, ((0, m_pad - m), (0, 0)))
    probs_rows = _head_pass(params, g_rows, tm, is_weight_size)  # (m_pad, head_pad)

    probs_seq = probs_rows[:m].reshape(t_pad, b, head_pad)[:t, :, :is_weight_size]
    h_final = grux_seq[t - 1]
    return probs_seq, h_final


@functools.partial(jax.jit, static_argnames=("is_weight_size",))
def attention_net_forward(params, data, h, *, is_weight_size):
    """Exactly AttentionNet.forward(data, h) -> (softmax(fc10_mean(...)), grux)."""
    probs_seq, h_final = attention_net_forward_seq(
        params, data[None], h, is_weight_size=is_weight_size, ts=1)
    return probs_seq[0], h_final


# ----------------------------------------------------------------------------
# Pure-JAX reference (same bf16-weight / f32-accumulate precision as the kernels)
# ----------------------------------------------------------------------------
def attention_net_ref_step(params, data, h, is_weight_size):
    def lin(x, w):
        return jnp.dot(x.astype(jnp.bfloat16), w, preferred_element_type=jnp.float32)

    x = data
    for i in range(1, 8):
        x = jax.nn.relu(lin(x, params[f"w{i}"]))
    x = lin(x, params["w8"])
    g = h.shape[1]
    gi = lin(x, params["wih"])
    gh = lin(h, params["whh"])
    r = jax.nn.sigmoid(gi[:, :g] + gh[:, :g])
    z = jax.nn.sigmoid(gi[:, g:2 * g] + gh[:, g:2 * g])
    n = jnp.tanh(gi[:, 2 * g:] + r * gh[:, 2 * g:])
    grux = (1.0 - z) * n + z * h
    y = jax.nn.relu(lin(grux, params["w9"]))
    logits = lin(y, params["w10m"])[:, :is_weight_size]
    return jax.nn.softmax(logits, axis=-1), grux


if __name__ == "__main__":
    B = 8
    INPUT_SIZE = 32
    IS_WEIGHT_SIZE = 64
    GRU_SIZE = 128
    T = 8
    TS = 4

    key = jax.random.PRNGKey(0)
    k_params, k_data, k_h = jax.random.split(key, 3)
    params = init_attention_net_params(k_params, INPUT_SIZE, IS_WEIGHT_SIZE, GRU_SIZE)
    data_seq = jax.random.normal(k_data, (T, B, INPUT_SIZE), jnp.float32)
    h0 = jax.random.normal(k_h, (B, GRU_SIZE), jnp.float32)

    # --- single step: exactly the module forward ------------------------------
    probs, grux = attention_net_forward(params, data_seq[0], h0,
                                        is_weight_size=IS_WEIGHT_SIZE)
    jax.block_until_ready((probs, grux))

    ref_probs, ref_grux = attention_net_ref_step(params, data_seq[0], h0, IS_WEIGHT_SIZE)
    assert probs.shape == (B, IS_WEIGHT_SIZE) and grux.shape == (B, GRU_SIZE)
    assert jnp.allclose(probs, ref_probs, rtol=2e-3, atol=2e-3)
    assert jnp.allclose(grux, ref_grux, rtol=2e-3, atol=2e-3)
    assert jnp.allclose(jnp.sum(probs, axis=-1), 1.0, atol=1e-3)   # exact softmax divide

    # --- T steps: trunk/head batched over T*B, GRU blocked TS steps per grid iter
    probs_seq, h_final = attention_net_forward_seq(params, data_seq, h0,
                                                   is_weight_size=IS_WEIGHT_SIZE, ts=TS)
    jax.block_until_ready((probs_seq, h_final))

    h_ref = h0
    for step in range(T):
        p_ref, h_ref = attention_net_ref_step(params, data_seq[step], h_ref, IS_WEIGHT_SIZE)
        assert jnp.allclose(probs_seq[step], p_ref, rtol=2e-3, atol=2e-3)
        assert jnp.allclose(jnp.sum(probs_seq[step], axis=-1), 1.0, atol=1e-3)
    assert jnp.allclose(h_final, h_ref, rtol=2e-3, atol=2e-3)

    print("KERNEL_OK")
</pallas_src>

<mosaic_0001>
module attributes {stable_mosaic.version = 11 : i64} {
  func.func @trunk_kernel(%arg0: i32, %arg1: memref<8x32xf32, #tpu.memory_space<vmem>>, %arg2: memref<32x64xbf16, #tpu.memory_space<vmem>>, %arg3: memref<64x64xbf16, #tpu.memory_space<vmem>>, %arg4: memref<64x128xbf16, #tpu.memory_space<vmem>>, %arg5: memref<128x128xbf16, #tpu.memory_space<vmem>>, %arg6: memref<128x256xbf16, #tpu.memory_space<vmem>>, %arg7: memref<256x256xbf16, #tpu.memory_space<vmem>>, %arg8: memref<256x512xbf16, #tpu.memory_space<vmem>>, %arg9: memref<512x128xbf16, #tpu.memory_space<vmem>>, %arg10: memref<128x384xbf16, #tpu.memory_space<vmem>>, %arg11: memref<8x384xf32, #tpu.memory_space<vmem>>) attributes {dimension_semantics = [#tpu.dimension_semantics<parallel>], iteration_bounds = array<i64: 1>, scalar_prefetch = 0 : i64, scratch_operands = 0 : i64, tpu.core_type = #tpu.core_type<tc>, window_params = [{transform_indices = @transform_0, window_bounds = array<i64: 8, 32>}, {pipeline_mode = #tpu.pipeline_mode<synchronous>, transform_indices = @transform_1, window_bounds = array<i64: 32, 64>}, {pipeline_mode = #tpu.pipeline_mode<synchronous>, transform_indices = @transform_2, window_bounds = array<i64: 64, 64>}, {pipeline_mode = #tpu.pipeline_mode<synchronous>, transform_indices = @transform_3, window_bounds = array<i64: 64, 128>}, {pipeline_mode = #tpu.pipeline_mode<synchronous>, transform_indices = @transform_4, window_bounds = array<i64: 128, 128>}, {pipeline_mode = #tpu.pipeline_mode<synchronous>, transform_indices = @transform_5, window_bounds = array<i64: 128, 256>}, {pipeline_mode = #tpu.pipeline_mode<synchronous>, transform_indices = @transform_6, window_bounds = array<i64: 256, 256>}, {pipeline_mode = #tpu.pipeline_mode<synchronous>, transform_indices = @transform_7, window_bounds = array<i64: 256, 512>}, {pipeline_mode = #tpu.pipeline_mode<synchronous>, transform_indices = @transform_8, window_bounds = array<i64: 512, 128>}, {pipeline_mode = #tpu.pipeline_mode<synchronous>, transform_indices = @transform_9, window_bounds = array<i64: 128, 384>}, {transform_indices = @transform_10, window_bounds = array<i64: 8, 384>}]} {
    %c0 = arith.constant 0 : index
    %c0_0 = arith.constant 0 : index
    %0 = vector.load %arg1[%c0, %c0_0] : memref<8x32xf32, #tpu.memory_space<vmem>>, vector<8x32xf32>
    %1 = arith.truncf %0 : vector<8x32xf32> to vector<8x32xbf16>
    %c0_1 = arith.constant 0 : index
    %c0_2 = arith.constant 0 : index
    %2 = vector.load %arg2[%c0_1, %c0_2] : memref<32x64xbf16, #tpu.memory_space<vmem>>, vector<32x64xbf16>
    %cst = arith.constant dense<0.000000e+00> : vector<8x64xf32>
    %3 = tpu.matmul %1, %2, %cst {dimension_numbers = #tpu.dot_dimension_numbers<[1], [0], [0], [1], [0, 0, 1, 1], [], []>} : vector<8x32xbf16>, vector<32x64xbf16>, vector<8x64xf32> -> vector<8x64xf32>
    %cst_3 = arith.constant 0.000000e+00 : f32
    %4 = vector.broadcast %cst_3 : f32 to vector<8x64xf32>
    %5 = arith.maximumf %3, %4 : vector<8x64xf32>
    %6 = arith.truncf %5 : vector<8x64xf32> to vector<8x64xbf16>
    %c0_4 = arith.constant 0 : index
    %c0_5 = arith.constant 0 : index
    %7 = vector.load %arg3[%c0_4, %c0_5] : memref<64x64xbf16, #tpu.memory_space<vmem>>, vector<64x64xbf16>
    %cst_6 = arith.constant dense<0.000000e+00> : vector<8x64xf32>
    %8 = tpu.matmul %6, %7, %cst_6 {dimension_numbers = #tpu.dot_dimension_numbers<[1], [0], [0], [1], [0, 0, 1, 1], [], []>} : vector<8x64xbf16>, vector<64x64xbf16>, vector<8x64xf32> -> vector<8x64xf32>
    %cst_7 = arith.constant 0.000000e+00 : f32
    %9 = vector.broadcast %cst_7 : f32 to vector<8x64xf32>
    %10 = arith.maximumf %8, %9 : vector<8x64xf32>
    %11 = arith.truncf %10 : vector<8x64xf32> to vector<8x64xbf16>
    %c0_8 = arith.constant 0 : index
    %c0_9 = arith.constant 0 : index
    %12 = vector.load %arg4[%c0_8, %c0_9] : memref<64x128xbf16, #tpu.memory_space<vmem>>, vector<64x128xbf16>
    %cst_10 = arith.constant dense<0.000000e+00> : vector<8x128xf32>
    %13 = tpu.matmul %11, %12, %cst_10 {dimension_numbers = #tpu.dot_dimension_numbers<[1], [0], [0], [1], [0, 0, 1, 1], [], []>} : vector<8x64xbf16>, vector<64x128xbf16>, vector<8x128xf32> -> vector<8x128xf32>
    %cst_11 = arith.constant 0.000000e+00 : f32
    %14 = vector.broadcast %cst_11 : f32 to vector<8x128xf32>
    %15 = arith.maximumf %13, %14 : vector<8x128xf32>
    %16 = arith.truncf %15 : vector<8x128xf32> to vector<8x128xbf16>
    %c0_12 = arith.constant 0 : index
    %c0_13 = arith.constant 0 : index
    %17 = vector.load %arg5[%c0_12, %c0_13] : memref<128x128xbf16, #tpu.memory_space<vmem>>, vector<128x128xbf16>
    %cst_14 = arith.constant dense<0.000000e+00> : vector<8x128xf32>
    %18 = tpu.matmul %16, %17, %cst_14 {dimension_numbers = #tpu.dot_dimension_numbers<[1], [0], [0], [1], [0, 0, 1, 1], [], []>} : vector<8x128xbf16>, vector<128x128xbf16>, vector<8x128xf32> -> vector<8x128xf32>
    %cst_15 = arith.constant 0.000000e+00 : f32
    %19 = vector.broadcast %cst_15 : f32 to vector<8x128xf32>
    %20 = arith.maximumf %18, %19 : vector<8x128xf32>
    %21 = arith.truncf %20 : vector<8x128xf32> to vector<8x128xbf16>
    %c0_16 = arith.constant 0 : index
    %c0_17 = arith.constant 0 : index
    %22 = vector.load %arg6[%c0_16, %c0_17] : memref<128x256xbf16, #tpu.memory_space<vmem>>, vector<128x256xbf16>
    %cst_18 = arith.constant dense<0.000000e+00> : vector<8x256xf32>
    %23 = tpu.matmul %21, %22, %cst_18 {dimension_numbers = #tpu.dot_dimension_numbers<[1], [0], [0], [1], [0, 0, 1, 1], [], []>} : vector<8x128xbf16>, vector<128x256xbf16>, vector<8x256xf32> -> vector<8x256xf32>
    %cst_19 = arith.constant 0.000000e+00 : f32
    %24 = vector.broadcast %cst_19 : f32 to vector<8x256xf32>
    %25 = arith.maximumf %23, %24 : vector<8x256xf32>
    %26 = arith.truncf %25 : vector<8x256xf32> to vector<8x256xbf16>
    %c0_20 = arith.constant 0 : index
    %c0_21 = arith.constant 0 : index
    %27 = vector.load %arg7[%c0_20, %c0_21] : memref<256x256xbf16, #tpu.memory_space<vmem>>, vector<256x256xbf16>
    %cst_22 = arith.constant dense<0.000000e+00> : vector<8x256xf32>
    %28 = tpu.matmul %26, %27, %cst_22 {dimension_numbers = #tpu.dot_dimension_numbers<[1], [0], [0], [1], [0, 0, 1, 1], [], []>} : vector<8x256xbf16>, vector<256x256xbf16>, vector<8x256xf32> -> vector<8x256xf32>
    %cst_23 = arith.constant 0.000000e+00 : f32
    %29 = vector.broadcast %cst_23 : f32 to vector<8x256xf32>
    %30 = arith.maximumf %28, %29 : vector<8x256xf32>
    %31 = arith.truncf %30 : vector<8x256xf32> to vector<8x256xbf16>
    %c0_24 = arith.constant 0 : index
    %c0_25 = arith.constant 0 : index
    %32 = vector.load %arg8[%c0_24, %c0_25] : memref<256x512xbf16, #tpu.memory_space<vmem>>, vector<256x512xbf16>
    %cst_26 = arith.constant dense<0.000000e+00> : vector<8x512xf32>
    %33 = tpu.matmul %31, %32, %cst_26 {dimension_numbers = #tpu.dot_dimension_numbers<[1], [0], [0], [1], [0, 0, 1, 1], [], []>} : vector<8x256xbf16>, vector<256x512xbf16>, vector<8x512xf32> -> vector<8x512xf32>
    %cst_27 = arith.constant 0.000000e+00 : f32
    %34 = vector.broadcast %cst_27 : f32 to vector<8x512xf32>
    %35 = arith.maximumf %33, %34 : vector<8x512xf32>
    %36 = arith.truncf %35 : vector<8x512xf32> to vector<8x512xbf16>
    %c0_28 = arith.constant 0 : index
    %c0_29 = arith.constant 0 : index
    %37 = vector.load %arg9[%c0_28, %c0_29] : memref<512x128xbf16, #tpu.memory_space<vmem>>, vector<512x128xbf16>
    %cst_30 = arith.constant dense<0.000000e+00> : vector<8x128xf32>
    %38 = tpu.matmul %36, %37, %cst_30 {dimension_numbers = #tpu.dot_dimension_numbers<[1], [0], [0], [1], [0, 0, 1, 1], [], []>} : vector<8x512xbf16>, vector<512x128xbf16>, vector<8x128xf32> -> vector<8x128xf32>
    %39 = arith.truncf %38 : vector<8x128xf32> to vector<8x128xbf16>
    %c0_31 = arith.constant 0 : index
    %c0_32 = arith.constant 0 : index
    %40 = vector.load %arg10[%c0_31, %c0_32] : memref<128x384xbf16, #tpu.memory_space<vmem>>, vector<128x384xbf16>
    %cst_33 = arith.constant dense<0.000000e+00> : vector<8x384xf32>
    %41 = tpu.matmul %39, %40, %cst_33 {dimension_numbers = #tpu.dot_dimension_numbers<[1], [0], [0], [1], [0, 0, 1, 1], [], []>} : vector<8x128xbf16>, vector<128x384xbf16>, vector<8x384xf32> -> vector<8x384xf32>
    %c0_34 = arith.constant 0 : index
    %c0_35 = arith.constant 0 : index
    %42 = vector.load %arg11[%c0_34, %c0_35] : memref<8x384xf32, #tpu.memory_space<vmem>>, vector<8x384xf32>
    tpu.vector_store %arg11[%c0_34, %c0_35], %41 {strides = array<i32>} : memref<8x384xf32, #tpu.memory_space<vmem>>, vector<8x384xf32>,
    return
  }
  func.func @transform_0(%arg0: i32) -> (i32, i32) {
    %c0_i32 = arith.constant 0 : i32
    %c0_i32_0 = arith.constant 0 : i32
    return %arg0, %c0_i32 : i32, i32
  }
  func.func @transform_1(%arg0: i32) -> (i32, i32) {
    %c0_i32 = arith.constant 0 : i32
    %c0_i32_0 = arith.constant 0 : i32
    %c0_i32_1 = arith.constant 0 : i32
    return %c0_i32, %c0_i32_0 : i32, i32
  }
  func.func @transform_2(%arg0: i32) -> (i32, i32) {
    %c0_i32 = arith.constant 0 : i32
    %c0_i32_0 = arith.constant 0 : i32
    %c0_i32_1 = arith.constant 0 : i32
    return %c0_i32, %c0_i32_0 : i32, i32
  }
  func.func @transform_3(%arg0: i32) -> (i32, i32) {
    %c0_i32 = arith.constant 0 : i32
    %c0_i32_0 = arith.constant 0 : i32
    %c0_i32_1 = arith.constant 0 : i32
    return %c0_i32, %c0_i32_0 : i32, i32
  }
  func.func @transform_4(%arg0: i32) -> (i32, i32) {
    %c0_i32 = arith.constant 0 : i32
    %c0_i32_0 = arith.constant 0 : i32
    %c0_i32_1 = arith.constant 0 : i32
    return %c0_i32, %c0_i32_0 : i32, i32
  }
  func.func @transform_5(%arg0: i32) -> (i32, i32) {
    %c0_i32 = arith.constant 0 : i32
    %c0_i32_0 = arith.constant 0 : i32
    %c0_i32_1 = arith.constant 0 : i32
    return %c0_i32, %c0_i32_0 : i32, i32
  }
  func.func @transform_6(%arg0: i32) -> (i32, i32) {
    %c0_i32 = arith.constant 0 : i32
    %c0_i32_0 = arith.constant 0 : i32
    %c0_i32_1 = arith.constant 0 : i32
    return %c0_i32, %c0_i32_0 : i32, i32
  }
  func.func @transform_7(%arg0: i32) -> (i32, i32) {
    %c0_i32 = arith.constant 0 : i32
    %c0_i32_0 = arith.constant 0 : i32
    %c0_i32_1 = arith.constant 0 : i32
    return %c0_i32, %c0_i32_0 : i32, i32
  }
  func.func @transform_8(%arg0: i32) -> (i32, i32) {
    %c0_i32 = arith.constant 0 : i32
    %c0_i32_0 = arith.constant 0 : i32
    %c0_i32_1 = arith.constant 0 : i32
    return %c0_i32, %c0_i32_0 : i32, i32
  }
  func.func @transform_9(%arg0: i32) -> (i32, i32) {
    %c0_i32 = arith.constant 0 : i32
    %c0_i32_0 = arith.constant 0 : i32
    %c0_i32_1 = arith.constant 0 : i32
    return %c0_i32, %c0_i32_0 : i32, i32
  }
  func.func @transform_10(%arg0: i32) -> (i32, i32) {
    %c0_i32 = arith.constant 0 : i32
    %c0_i32_0 = arith.constant 0 : i32
    return %arg0, %c0_i32 : i32, i32
  }
}

module attributes {stable_mosaic.version = 11 : i64} {
  func.func @head_kernel(%arg0: i32, %arg1: memref<8x128xf32, #tpu.memory_space<vmem>>, %arg2: memref<128x512xbf16, #tpu.memory_space<vmem>>, %arg3: memref<512x128xbf16, #tpu.memory_space<vmem>>, %arg4: memref<8x128xf32, #tpu.memory_space<vmem>>) attributes {dimension_semantics = [#tpu.dimension_semantics<parallel>], iteration_bounds = array<i64: 1>, scalar_prefetch = 0 : i64, scratch_operands = 0 : i64, tpu.core_type = #tpu.core_type<tc>, window_params = [{transform_indices = @transform_0, window_bounds = array<i64: 8, 128>}, {pipeline_mode = #tpu.pipeline_mode<synchronous>, transform_indices = @transform_1, window_bounds = array<i64: 128, 512>}, {pipeline_mode = #tpu.pipeline_mode<synchronous>, transform_indices = @transform_2, window_bounds = array<i64: 512, 128>}, {transform_indices = @transform_3, window_bounds = array<i64: 8, 128>}]} {
    %c0 = arith.constant 0 : index
    %c0_0 = arith.constant 0 : index
    %0 = vector.load %arg1[%c0, %c0_0] : memref<8x128xf32, #tpu.memory_space<vmem>>, vector<8x128xf32>
    %1 = arith.truncf %0 : vector<8x128xf32> to vector<8x128xbf16>
    %c0_1 = arith.constant 0 : index
    %c0_2 = arith.constant 0 : index
    %2 = vector.load %arg2[%c0_1, %c0_2] : memref<128x512xbf16, #tpu.memory_space<vmem>>, vector<128x512xbf16>
    %cst = arith.constant dense<0.000000e+00> : vector<8x512xf32>
    %3 = tpu.matmul %1, %2, %cst {dimension_numbers = #tpu.dot_dimension_numbers<[1], [0], [0], [1], [0, 0, 1, 1], [], []>} : vector<8x128xbf16>, vector<128x512xbf16>, vector<8x512xf32> -> vector<8x512xf32>
    %cst_3 = arith.constant 0.000000e+00 : f32
    %4 = vector.broadcast %cst_3 : f32 to vector<8x512xf32>
    %5 = arith.maximumf %3, %4 : vector<8x512xf32>
    %6 = arith.truncf %5 : vector<8x512xf32> to vector<8x512xbf16>
    %c0_4 = arith.constant 0 : index
    %c0_5 = arith.constant 0 : index
    %7 = vector.load %arg3[%c0_4, %c0_5] : memref<512x128xbf16, #tpu.memory_space<vmem>>, vector<512x128xbf16>
    %cst_6 = arith.constant dense<0.000000e+00> : vector<8x128xf32>
    %8 = tpu.matmul %6, %7, %cst_6 {dimension_numbers = #tpu.dot_dimension_numbers<[1], [0], [0], [1], [0, 0, 1, 1], [], []>} : vector<8x512xbf16>, vector<512x128xbf16>, vector<8x128xf32> -> vector<8x128xf32>
    %9 = tpu.iota {dimensions = array<i32: 1>} : vector<8x128xi32>
    %c64_i32 = arith.constant 64 : i32
    %10 = vector.broadcast %c64_i32 : i32 to vector<8x128xi32>
    %11 = arith.cmpi slt, %9, %10 : vector<8x128xi32>
    %cst_7 = arith.constant -1.000000e+30 : f32
    %12 = vector.broadcast %cst_7 : f32 to vector<8x128xf32>
    %13 = arith.select %11, %8, %12 : vector<8x128xi1>, vector<8x128xf32>
    %cst_8 = arith.constant dense<0xFF800000> : vector<8xf32>
    %14 = vector.multi_reduction <maximumf>, %13, %cst_8 [1] : vector<8x128xf32> to vector<8xf32>
    %15 = vector.shape_cast %14 : vector<8xf32> to vector<8x1xf32>
    %16 = vector.broadcast %15 : vector<8x1xf32> to vector<8x128xf32>
    %17 = arith.subf %13, %16 : vector<8x128xf32>
    %18 = math.exp %17 : vector<8x128xf32>
    %cst_9 = arith.constant dense<0.000000e+00> : vector<8xf32>
    %19 = vector.multi_reduction <add>, %18, %cst_9 [1] : vector<8x128xf32> to vector<8xf32>
    %20 = vector.shape_cast %19 : vector<8xf32> to vector<8x1xf32>
    %21 = vector.broadcast %20 : vector<8x1xf32> to vector<8x128xf32>
    %22 = arith.divf %18, %21 : vector<8x128xf32>
    %c0_10 = arith.constant 0 : index
    %c0_11 = arith.constant 0 : index
    %23 = vector.load %arg4[%c0_10, %c0_11] : memref<8x128xf32, #tpu.memory_space<vmem>>, vector<8x128xf32>
    tpu.vector_store %arg4[%c0_10, %c0_11], %22 {strides = array<i32>} : memref<8x128xf32, #tpu.memory_space<vmem>>, vector<8x128xf32>,
    return
  }
  func.func @transform_0(%arg0: i32) -> (i32, i32) {
    %c0_i32 = arith.constant 0 : i32
    %c0_i32_0 = arith.constant 0 : i32
    return %arg0, %c0_i32 : i32, i32
  }
  func.func @transform_1(%arg0: i32) -> (i32, i32) {
    %c0_i32 = arith.constant 0 : i32
    %c0_i32_0 = arith.constant 0 : i32
    %c0_i32_1 = arith.constant 0 : i32
    return %c0_i32, %c0_i32_0 : i32, i32
  }
  func.func @transform_2(%arg0: i32) -> (i32, i32) {
    %c0_i32 = arith.constant 0 : i32
    %c0_i32_0 = arith.constant 0 : i32
    %c0_i32_1 = arith.constant 0 : i32
    return %c0_i32, %c0_i32_0 : i32, i32
  }
  func.func @transform_3(%arg0: i32) -> (i32, i32) {
    %c0_i32 = arith.constant 0 : i32
    %c0_i32_0 = arith.constant 0 : i32
    return %arg0, %c0_i32 : i32, i32
  }
}

module attributes {stable_mosaic.version = 11 : i64} {
  func.func @gru_kernel(%arg0: i32, %arg1: memref<1x8x384xf32, #tpu.memory_space<vmem>>, %arg2: memref<8x128xf32, #tpu.memory_space<vmem>>, %arg3: memref<128x384xbf16, #tpu.memory_space<vmem>>, %arg4: memref<1x8x128xf32, #tpu.memory_space<vmem>>, %arg5: memref<8x128xf32, #tpu.memory_space<vmem>>) attributes {dimension_semantics = [#tpu.dimension_semantics<arbitrary>], iteration_bounds = array<i64: 1>, scalar_prefetch = 0 : i64, scratch_operands = 1 : i64, tpu.core_type = #tpu.core_type<tc>, window_params = [{transform_indices = @transform_0, window_bounds = array<i64: 1, 8, 384>}, {pipeline_mode = #tpu.pipeline_mode<synchronous>, transform_indices = @transform_1, window_bounds = array<i64: 8, 128>}, {pipeline_mode = #tpu.pipeline_mode<synchronous>, transform_indices = @transform_2, window_bounds = array<i64: 128, 384>}, {transform_indices = @transform_3, window_bounds = array<i64: 1, 8, 128>}]} {
    %c0_i32 = arith.constant 0 : i32
    %0 = arith.cmpi eq, %arg0, %c0_i32 : i32
    %1 = arith.extui %0 : i1 to i32
    %c0_i32_0 = arith.constant 0 : i32
    %2 = arith.cmpi ne, %1, %c0_i32_0 : i32
    scf.if %2 {
      %c0_15 = arith.constant 0 : index
      %c0_16 = arith.constant 0 : index
      %39 = vector.load %arg2[%c0_15, %c0_16] : memref<8x128xf32, #tpu.memory_space<vmem>>, vector<8x128xf32>
      %c0_17 = arith.constant 0 : index
      %c0_18 = arith.constant 0 : index
      %40 = vector.load %arg5[%c0_17, %c0_18] : memref<8x128xf32, #tpu.memory_space<vmem>>, vector<8x128xf32>
      tpu.vector_store %arg5[%c0_17, %c0_18], %39 {strides = array<i32>} : memref<8x128xf32, #tpu.memory_space<vmem>>, vector<8x128xf32>,
    } else {
    }
    %c0 = arith.constant 0 : index
    %c0_1 = arith.constant 0 : index
    %3 = vector.load %arg5[%c0, %c0_1] : memref<8x128xf32, #tpu.memory_space<vmem>>, vector<8x128xf32>
    %c0_2 = arith.constant 0 : index
    %c0_3 = arith.constant 0 : index
    %c0_4 = arith.constant 0 : index
    %4 = vector.load %arg1[%c0_2, %c0_3, %c0_4] : memref<1x8x384xf32, #tpu.memory_space<vmem>>, vector<1x8x384xf32>
    %5 = vector.shape_cast %4 : vector<1x8x384xf32> to vector<8x384xf32>
    %6 = arith.truncf %3 : vector<8x128xf32> to vector<8x128xbf16>
    %c0_5 = arith.constant 0 : index
    %c0_6 = arith.constant 0 : index
    %7 = vector.load %arg3[%c0_5, %c0_6] : memref<128x384xbf16, #tpu.memory_space<vmem>>, vector<128x384xbf16>
    %cst = arith.constant dense<0.000000e+00> : vector<8x384xf32>
    %8 = tpu.matmul %6, %7, %cst {dimension_numbers = #tpu.dot_dimension_numbers<[1], [0], [0], [1], [0, 0, 1, 1], [], []>} : vector<8x128xbf16>, vector<128x384xbf16>, vector<8x384xf32> -> vector<8x384xf32>
    %9 = vector.extract_strided_slice %5 {offsets = [0, 0], sizes = [8, 128], strides = [1, 1]} : vector<8x384xf32> to vector<8x128xf32>
    %10 = vector.extract_strided_slice %8 {offsets = [0, 0], sizes = [8, 128], strides = [1, 1]} : vector<8x384xf32> to vector<8x128xf32>
    %11 = arith.addf %9, %10 : vector<8x128xf32>
    %12 = arith.negf %11 : vector<8x128xf32>
    %13 = math.exp %12 : vector<8x128xf32>
    %cst_7 = arith.constant 1.000000e+00 : f32
    %14 = vector.broadcast %cst_7 : f32 to vector<8x128xf32>
    %15 = arith.addf %14, %13 : vector<8x128xf32>
    %16 = arith.divf %14, %15 : vector<8x128xf32>
    %17 = vector.extract_strided_slice %5 {offsets = [0, 128], sizes = [8, 128], strides = [1, 1]} : vector<8x384xf32> to vector<8x128xf32>
    %18 = vector.extract_strided_slice %8 {offsets = [0, 128], sizes = [8, 128], strides = [1, 1]} : vector<8x384xf32> to vector<8x128xf32>
    %19 = arith.addf %17, %18 : vector<8x128xf32>
    %20 = arith.negf %19 : vector<8x128xf32>
    %21 = math.exp %20 : vector<8x128xf32>
    %cst_8 = arith.constant 1.000000e+00 : f32
    %22 = vector.broadcast %cst_8 : f32 to vector<8x128xf32>
    %23 = arith.addf %22, %21 : vector<8x128xf32>
    %24 = arith.divf %22, %23 : vector<8x128xf32>
    %25 = vector.extract_strided_slice %5 {offsets = [0, 256], sizes = [8, 128], strides = [1, 1]} : vector<8x384xf32> to vector<8x128xf32>
    %26 = vector.extract_strided_slice %8 {offsets = [0, 256], sizes = [8, 128], strides = [1, 1]} : vector<8x384xf32> to vector<8x128xf32>
    %27 = arith.mulf %16, %26 : vector<8x128xf32>
    %28 = arith.addf %25, %27 : vector<8x128xf32>
    %29 = math.tanh %28 : vector<8x128xf32>
    %cst_9 = arith.constant 1.000000e+00 : f32
    %30 = vector.broadcast %cst_9 : f32 to vector<8x128xf32>
    %31 = arith.subf %30, %24 : vector<8x128xf32>
    %32 = arith.mulf %31, %29 : vector<8x128xf32>
    %33 = arith.mulf %24, %3 : vector<8x128xf32>
    %34 = arith.addf %32, %33 : vector<8x128xf32>
    %c0_10 = arith.constant 0 : index
    %c0_11 = arith.constant 0 : index
    %c0_12 = arith.constant 0 : index
    %35 = vector.load %arg4[%c0_10, %c0_11, %c0_12] : memref<1x8x128xf32, #tpu.memory_space<vmem>>, vector<1x8x128xf32>
    %36 = vector.shape_cast %35 : vector<1x8x128xf32> to vector<8x128xf32>
    %37 = vector.shape_cast %34 : vector<8x128xf32> to vector<1x8x128xf32>
    tpu.vector_store %arg4[%c0_10, %c0_11, %c0_12], %37 {strides = array<i32>} : memref<1x8x128xf32, #tpu.memory_space<vmem>>, vector<1x8x128xf32>,
    %c0_13 = arith.constant 0 : index
    %c0_14 = arith.constant 0 : index
    %38 = vector.load %arg5[%c0_13, %c0_14] : memref<8x128xf32, #tpu.memory_space<vmem>>, vector<8x128xf32>
    tpu.vector_store %arg5[%c0_13, %c0_14], %34 {strides = array<i32>} : memref<8x128xf32, #tpu.memory_space<vmem>>, vector<8x128xf32>,
    return
  }
  func.func @transform_0(%arg0: i32) -> (i32, i32, i32) {
    %c0_i32 = arith.constant 0 : i32
    %c0_i32_0 = arith.constant 0 : i32
    %c0_i32_1 = arith.constant 0 : i32
    return %arg0, %c0_i32, %c0_i32_0 : i32, i32, i32
  }
  func.func @transform_1(%arg0: i32) -> (i32, i32) {
    %c0_i32 = arith.constant 0 : i32
    %c0_i32_0 = arith.constant 0 : i32
    %c0_i32_1 = arith.constant 0 : i32
    return %c0_i32, %c0_i32_0 : i32, i32
  }
  func.func @transform_2(%arg0: i32) -> (i32, i32) {
    %c0_i32 = arith.constant 0 : i32
    %c0_i32_0 = arith.constant 0 : i32
    %c0_i32_1 = arith.constant 0 : i32
    return %c0_i32, %c0_i32_0 : i32, i32
  }
  func.func @transform_3(%arg0: i32) -> (i32, i32, i32) {
    %c0_i32 = arith.constant 0 : i32
    %c0_i32_0 = arith.constant 0 : i32
    %c0_i32_1 = arith.constant 0 : i32
    return %arg0, %c0_i32, %c0_i32_0 : i32, i32, i32
  }
}

</mosaic_0001>

<bundles_post_ra>
// kernel: attention_net_forward_seq.4
= control target key start
LH: loop header
LB: loop body
LE: loop exit
PB: predicated region body
PF: predicated region fallthrough
CT: control target
= control target key end

     0   :  { %8 = vsyncpa [#allocation4], 0  ;;  %s544_s0 = inlined_call_operand.vmem [shape: f32[1,8,384], index: 0, kind: input, shape index: {}]   ;;  %s545_s1 = inlined_call_operand.hbm [shape: f32[8,128], index: 1, kind: input, shape index: {}]   ;;  %s546_s2 = inlined_call_operand.hbm [shape: bf16[128,384], index: 2, kind: input, shape index: {}]   ;;  %s547_s3 = inlined_call_operand.vmem [shape: f32[1,8,128], index: 3, kind: output, shape index: {}]  }
   0x1   :  { %s17_s14 = sshll.u32 %s545_s1, 4  ;;  %s18_s14 = int_to_ptr.hbm [resolvable:$true] %s17_s14 }
   0x2   :  { %9 = vsyncpa [#allocation6], 0  ;;  %s497_s15 = smov [#allocation3]   ;;  %s27_s19 = sshll.u32 %s546_s2, 4  ;;  %s28_s19 = int_to_ptr.hbm [resolvable:$true] %s27_s19 }
   0x3   :  { %s19_s16 = sshll.u32 %s497_s15, 4  ;;  %s498_s20 = smov [#allocation5]   ;;  %s20_s16 = int_to_ptr.vmem [resolvable:$true] %s19_s16 }
   0x4   :  { %22 = dma.hbm_to_vmem [thread:$0]  %s18_s14, 128, %s20_s16, [#allocation4]  }
   0x5   :  { %s29_s21 = sshll.u32 %s498_s20, 4  ;;  %s499_s22 = smov 192   ;;  %s30_s21 = int_to_ptr.vmem [resolvable:$true] %s29_s21 }
   0x6   :  { %s500_s23 = smov 12  }
   0x7   :  { %35 = dma.hbm_to_vmem [thread:$0]  %s28_s19, 3072, %s30_s21, [#allocation6], %s499_s22, %s499_s22, %s500_s23  }
   0x8   :  { %493 = dma.done.wait [#allocation4], 128  }
   0x9   :  { %494 = vsyncadd [#allocation4], 4294967168 }
   0xa   :  { %495 = dma.done.wait [#allocation6], 3072  }
   0xb   :  { %496 = vsyncadd [#allocation6], 4294964224  ;;  %v395_v0 = vld [vmem:[#allocation5 + $0xa8] sm:$0xf]  ;;  %v429_v1 = vld [vmem:[#allocation5 + $0xb0] sm:$0xf0] }
   0xc   :  { %v428_v2 = vld [vmem:[#allocation5 + $0xac] sm:$0xf]  ;;  %v396_v3 = vor.u32 %v429_v1, %v395_v0  ;;  %v397_v4 = vld [vmem:[#allocation5 + $0xb4] sm:$0xf0]  ;;  %v383_v5 = vld [vmem:[#allocation5 + $0x90] sm:$0xf] }
   0xd   :  { %v426_v6 = vld [vmem:[#allocation5 + $0x98] sm:$0xf0]  ;;  %v400_v7 = vor.u32 %v428_v2, %v397_v4  ;;  %v425_v8 = vld [vmem:[#allocation5 + $0x94] sm:$0xf]  ;;  %v385_v9 = vld [vmem:[#allocation5 + $0x9c] sm:$0xf0] }
   0xe   :  { %215 = vmatpush.bf16.msra.mxu0 %v396_v3  ;;  %v384_v10 = vor.u32 %v426_v6, %v383_v5  ;;  %v388_v11 = vor.u32 %v425_v8, %v385_v9  ;;  %v371_v12 = vld [vmem:[#allocation5 + $0x78] sm:$0xf]  ;;  %v423_v13 = vld [vmem:[#allocation5 + $0x80] sm:$0xf0]  ;;  %v422_v14 = vld [vmem:[#allocation5 + $0x7c] sm:$0xf] }
   0xf   :  { %228 = vmatpush.bf16.msra.mxu1 %v400_v7  ;;  %v373_v15 = vld [vmem:[#allocation5 + $0x84] sm:$0xf0]  ;;  %v403_v16 = vld [vmem:[#allocation5 + $0xb0] sm:$0xf]  ;;  %v372_v17 = vor.u32 %v423_v13, %v371_v12  ;;  %v430_v18 = vld [vmem:[#allocation5 + $0xb8] sm:$0xf0] }
  0x10   :  { %v376_v19 = vor.u32 %v422_v14, %v373_v15  ;;  %v359_v20 = vld [vmem:[#allocation5 + $0x60] sm:$0xf]  ;;  %v420_v21 = vld [vmem:[#allocation5 + $0x68] sm:$0xf0]  ;;  %v404_v22 = vor.u32 %v430_v18, %v403_v16  ;;  %v391_v23 = vld [vmem:[#allocation5 + $0x98] sm:$0xf] }
  0x11   :  { %v419_v24 = vld [vmem:[#allocation5 + $0x64] sm:$0xf]  ;;  %v361_v25 = vld [vmem:[#allocation5 + $0x6c] sm:$0xf0]  ;;  %v360_v28 = vor.u32 %v420_v21, %v359_v20  ;;  %v379_v29 = vld [vmem:[#allocation5 + $0x80] sm:$0xf] }
  0x12   :  { %216 = vmatpush.bf16.msra.mxu0 %v384_v10  ;;  %v427_v26 = vld [vmem:[#allocation5 + $0xa0] sm:$0xf0]  ;;  %241 = vmatpush.bf16.msra.mxu2 %v404_v22  ;;  %v424_v30 = vld [vmem:[#allocation5 + $0x88] sm:$0xf0]  ;;  %v364_v31 = vor.u32 %v419_v24, %v361_v25  ;;  %v347_v32 = vld [vmem:[#allocation5 + $0x48] sm:$0xf] }
  0x13   :  { %229 = vmatpush.bf16.msra.mxu1 %v388_v11  ;;  %v392_v27 = vor.u32 %v427_v26, %v391_v23  ;;  %v417_v33 = vld [vmem:[#allocation5 + $0x50] sm:$0xf0]  ;;  %v416_v34 = vld [vmem:[#allocation5 + $0x4c] sm:$0xf]  ;;  %v349_v35 = vld [vmem:[#allocation5 + $0x54] sm:$0xf0]  ;;  %v380_v36 = vor.u32 %v424_v30, %v379_v29 }
  0x14   :  { %v348_v37 = vor.u32 %v417_v33, %v347_v32  ;;  %v367_v38 = vld [vmem:[#allocation5 + $0x68] sm:$0xf]  ;;  %v421_v39 = vld [vmem:[#allocation5 + $0x70] sm:$0xf0]  ;;  %v352_v40 = vor.u32 %v416_v34, %v349_v35  ;;  %v335_v41 = vld [vmem:[#allocation5 + $0x30] sm:$0xf] }
  0x15   :  { %v414_v42 = vld [vmem:[#allocation5 + $0x38] sm:$0xf0]  ;;  %v413_v43 = vld [vmem:[#allocation5 + $0x34] sm:$0xf]  ;;  %v337_v44 = vld [vmem:[#allocation5 + $0x3c] sm:$0xf0]  ;;  %v368_v45 = vor.u32 %v421_v39, %v367_v38 }
  0x16   :  { %217 = vmatpush.bf16.msra.mxu0 %v372_v17  ;;  %242 = vmatpush.bf16.msra.mxu2 %v392_v27  ;;  %v336_v46 = vor.u32 %v414_v42, %v335_v41  ;;  %v355_v47 = vld [vmem:[#allocation5 + $0x50] sm:$0xf]  ;;  %v418_v48 = vld [vmem:[#allocation5 + $0x58] sm:$0xf0]  ;;  %v340_v49 = vor.u32 %v413_v43, %v337_v44  ;;  %v323_v50 = vld [vmem:[#allocation5 + $0x18] sm:$0xf] }
  0x17   :  { %230 = vmatpush.bf16.msra.mxu1 %v376_v19  ;;  %v411_v51 = vld [vmem:[#allocation5 + $0x20] sm:$0xf0]  ;;  %v410_v52 = vld [vmem:[#allocation5 + $0x1c] sm:$0xf]  ;;  %v325_v53 = vld [vmem:[#allocation5 + $0x24] sm:$0xf0]  ;;  %v356_v54 = vor.u32 %v418_v48, %v355_v47 }
  0x18   :  { %v324_v55 = vor.u32 %v411_v51, %v323_v50  ;;  %v343_v56 = vld [vmem:[#allocation5 + $0x38] sm:$0xf]  ;;  %v415_v57 = vld [vmem:[#allocation5 + $0x40] sm:$0xf0]  ;;  %v328_v58 = vor.u32 %v410_v52, %v325_v53  ;;  %v311_v59 = vld [vmem:[#allocation5] sm:$0xf] }
  0x19   :  { %v408_v60 = vld [vmem:[#allocation5 + $0x8] sm:$0xf0]  ;;  %v407_v61 = vld [vmem:[#allocation5 + $0x4] sm:$0xf]  ;;  %v313_v62 = vld [vmem:[#allocation5 + $0xc] sm:$0xf0]  ;;  %v344_v63 = vor.u32 %v415_v57, %v343_v56 }
  0x1a   :  { %218 = vmatpush.bf16.msra.mxu0 %v360_v28  ;;  %243 = vmatpush.bf16.msra.mxu2 %v380_v36  ;;  %v312_v0 = vor.u32 %v408_v60, %v311_v59  ;;  %v527_v1 = vld [vmem:[#allocation3] sm:$0xff]  ;;  %v331_v2 = vld [vmem:[#allocation5 + $0x20] sm:$0xf]  ;;  %v412_v3 = vld [vmem:[#allocation5 + $0x28] sm:$0xf0]  ;;  %v316_v4 = vor.u32 %v407_v61, %v313_v62 }
  0x1b   :  { %231 = vmatpush.bf16.msra.mxu1 %v364_v31  ;;  %v54_v5 = vpack.c.bf16 %v527_v1, %v527_v1  ;;  %v332_v6 = vor.u32 %v412_v3, %v331_v2  ;;  %v319_v7 = vld [vmem:[#allocation5 + $0x8] sm:$0xf]  ;;  %v409_v8 = vld [vmem:[#allocation5 + $0x10] sm:$0xf0]  ;;  %v51_v10 = vld [vmem:[%s544_s0] sm:$0xff] }
  0x1c   :  { %v320_v9 = vor.u32 %v409_v8, %v319_v7  ;;  %v52_v11 = vld [vmem:[%s544_s0 + $0x8] sm:$0xff]  ;;  %v53_v39 = vld [vmem:[%s544_s0 + $0x10] sm:$0xff] }
  0x1e   :  { %219 = vmatpush.bf16.msra.mxu0 %v348_v37  ;;  %244 = vmatpush.bf16.msra.mxu2 %v368_v45 }
  0x1f   :  { %232 = vmatpush.bf16.msra.mxu1 %v352_v40 }
  0x22   :  { %220 = vmatpush.bf16.msra.mxu0 %v336_v46  ;;  %245 = vmatpush.bf16.msra.mxu2 %v356_v54 }
  0x23   :  { %233 = vmatpush.bf16.msra.mxu1 %v340_v49 }
  0x26   :  { %221 = vmatpush.bf16.msra.mxu0 %v324_v55  ;;  %246 = vmatpush.bf16.msra.mxu2 %v344_v63 }
  0x27   :  { %234 = vmatpush.bf16.msra.mxu1 %v328_v58 }
  0x2a   :  { %222 = vmatpush.bf16.msra.mxu0 %v312_v0  ;;  %247 = vmatpush.bf16.msra.mxu2 %v332_v6 }
  0x2b   :  { %235 = vmatpush.bf16.msra.mxu1 %v316_v4 }
  0x2d   :  { %223 = vmatmul.bf16.vlgmr.msra.gmra.mxu0 %v54_v5 }
  0x2e   :  { %236 = vmatmul.bf16.vlgmr.msra.gmra.mxu1 %v54_v5  ;;  %248 = vmatpush.bf16.msra.mxu2 %v320_v9 }
  0x31   :  { %249 = vmatmul.bf16.vlgmr.msra.gmra.mxu2 %v54_v5 }
  0xaa   :  { %v224_v12 = vpop.f32.mrf.mxu0 }
  0xab   :  { %v254_v13 = vadd.f32 %v224_v12, %v51_v10  ;;  %v237_v14 = vpop.f32.mrf.mxu1 }
  0xac   :  { %v274_v15 = vadd.f32 %v237_v14, %v52_v11 }
  0xad   :  { %v405_v16 = vmul.f32 -1.442695, %v254_v13 }
  0xae   :  { %v406_v17 = vmul.f32 -1.442695, %v274_v15 }
  0xaf   :  { %435 = vpow2.f32 %v405_v16 }
  0xb0   :  { %437 = vpow2.f32 %v406_v17 }
  0xb2   :  { %v226_v18 = vpop.f32.mrf.mxu0 }
  0xb3   :  { %v239_v19 = vpop.f32.mrf.mxu1 }
  0xb4   :  { %v250_v24 = vpop.f32.mrf.mxu2 }
  0xb5   :  { %v436_v20 = vpop.eup %435 }
  0xb6   :  { %v438_v21 = vpop.eup %437  ;;  %v258_v22 = vadd.f32 1.0, %v436_v20 }
  0xb7   :  { %v278_v23 = vadd.f32 1.0, %v438_v21 }
  0xb8   :  { %439 = vrcp.f32 %v258_v22  ;;  %v270_v32 = vand.u32 2147483648, %v258_v22  ;;  %v268_v34 = vand.u32 2147483647, %v258_v22  ;;  %vm264_vm1 = vweird.f32 %v258_v22 }
  0xb9   :  { %441 = vrcp.f32 %v278_v23  ;;  %vm284_vm4 = vweird.f32 %v278_v23  ;;  %v290_v42 = vand.u32 2147483648, %v278_v23  ;;  %v288_v44 = vand.u32 2147483647, %v278_v23 }
  0xba   :  { %v271_v37 = vor.u32 1.1754944e-38, %v270_v32  ;;  %vm269_vm3 = vcmp.eq.f32.partialorder %v268_v34, 8.507059e+37 }
  0xbb   :  { %v291_v47 = vor.u32 1.1754944e-38, %v290_v42  ;;  %vm289_vm7 = vcmp.eq.f32.partialorder %v288_v44, 8.507059e+37 }
  0xbc   :  { %v252_v28 = vpop.f32.mrf.mxu2 }
  0xbe   :  { %v440_v25 = vpop.eup %439 }
  0xbf   :  { %v442_v26 = vpop.eup %441  ;;  %v260_v27 = vmul.f32 %v440_v25, %v258_v22  ;;  %vm265_vm0 = vweird.f32 %v440_v25 }
  0xc0   :  { %v280_v29 = vmul.f32 %v442_v26, %v278_v23  ;;  %vm266_vm2 = vmor %vm264_vm1, %vm265_vm0  ;;  %vm285_vm5 = vweird.f32 %v442_v26 }
  0xc1   :  { %v261_v30 = vsub.f32 1.0, %v260_v27  ;;  %vm286_vm6 = vmor %vm284_vm4, %vm285_vm5 }
  0xc2   :  { %v281_v31 = vsub.f32 1.0, %v280_v29 }
  0xc3   :  { %v262_v33 = vmul.f32 %v440_v25, %v261_v30 }
  0xc4   :  { %v282_v35 = vmul.f32 %v442_v26, %v281_v31 }
  0xc5   :  { %v263_v36 = vadd.f32 %v440_v25, %v262_v33 }
  0xc6   :  { %v283_v41 = vadd.f32 %v442_v26, %v282_v35 }
  0xc7   :  { %v267_v38 = vsel %vm266_vm2, %v440_v25, %v263_v36 }
  0xc8   :  { %v272_v40 = vsel %vm269_vm3, %v271_v37, %v267_v38  ;;  %v287_v46 = vsel %vm286_vm6, %v442_v26, %v283_v41 }
  0xc9   :  { %v294_v43 = vmul.f32 %v272_v40, %v250_v24  ;;  %v292_v48 = vsel %vm289_vm7, %v291_v47, %v287_v46 }
  0xca   :  { %v297_v49 = vsub.f32 1.0, %v292_v48  ;;  %v299_v52 = vmul.f32 %v292_v48, %v527_v1 }
  0xcb   :  { %v295_v45 = vadd.f32 %v294_v43, %v53_v39 }
  0xcd   :  { %443 = vtanh.f32 %v295_v45 }
  0xd3   :  { %v444_v50 = vpop.eup %443 }
  0xd4   :  { %v298_v51 = vmul.f32 %v444_v50, %v297_v49 }
  0xd6   :  { %v300_v53 = vadd.f32 %v299_v52, %v298_v51 }
  0xd8   :  { %301 = vst [vmem:[%s547_s3] sm:$0xff] %v300_v53 }
  0xd9   :  { %307 = vsyncpa [#allocation4], 1 }
  0xda   :  { %308 = vsyncpa [#allocation6], 1 }

// kernel: attention_net_forward_seq.5
= control target key start
LH: loop header
LB: loop body
LE: loop exit
PB: predicated region body
PF: predicated region fallthrough
CT: control target
= control target key end

     0   :  { %8 = vsyncpa [#allocation3], 0  ;;  %s1102_s0 = inlined_call_operand.vmem [shape: f32[8,128], index: 0, kind: input, shape index: {}]   ;;  %s1103_s1 = inlined_call_operand.hbm [shape: bf16[128,512], index: 1, kind: input, shape index: {}]   ;;  %s1104_s2 = inlined_call_operand.hbm [shape: bf16[512,128], index: 2, kind: input, shape index: {}]   ;;  %s1105_s3 = inlined_call_operand.hbm [shape: f32[8,128], index: 3, kind: output, shape index: {}]  }
   0x1   :  { %9 = vsyncpa [#allocation6], 0 }
   0x2   :  { %10 = vsyncpa [#allocation4], 0  ;;  %s17_s14 = sshll.u32 %s1103_s1, 4  ;;  %s1063_s15 = smov [#allocation2]   ;;  %s18_s14 = int_to_ptr.hbm [resolvable:$true] %s17_s14 }
   0x3   :  { %s19_s16 = sshll.u32 %s1063_s15, 4  ;;  %s30_s19 = sshll.u32 %s1104_s2, 4  ;;  %s20_s16 = int_to_ptr.vmem [resolvable:$true] %s19_s16  ;;  %s31_s19 = int_to_ptr.hbm [resolvable:$true] %s30_s19 }
   0x4   :  { %s1064_s20 = smov 256   ;;  %s1065_s21 = smov 16  }
   0x5   :  { %25 = dma.hbm_to_vmem [thread:$0]  %s18_s14, 4096, %s20_s16, [#allocation3], %s1064_s20, %s1064_s20, %s1065_s21  }
   0x6   :  { %s1066_s22 = smov [#allocation5]   ;;  %s1067_s24 = smov 64  }
   0x7   :  { %s32_s23 = sshll.u32 %s1066_s22, 4  ;;  %s1068_s25 = smov 4   ;;  %s33_s23 = int_to_ptr.vmem [resolvable:$true] %s32_s23 }
   0x8   :  { %38 = dma.hbm_to_vmem [thread:$0]  %s31_s19, 4096, %s33_s23, [#allocation6], %s1067_s24, %s1067_s24, %s1068_s25  }
   0x9   :  { %1057 = dma.done.wait [#allocation3], 4096  }
   0xa   :  { %1058 = vsyncadd [#allocation3], 4294963200 }
   0xb   :  { %1059 = dma.done.wait [#allocation6], 4096  }
   0xc   :  { %1060 = vsyncadd [#allocation6], 4294963200  ;;  %v776_v0 = vld [vmem:[#allocation2 + $0xe8] sm:$0xf]  ;;  %v941_v1 = vld [vmem:[#allocation2 + $0xf4] sm:$0xf0] }
   0xd   :  { %v939_v2 = vld [vmem:[#allocation2 + $0xec] sm:$0xf]  ;;  %v777_v3 = vor.u32 %v941_v1, %v776_v0  ;;  %v778_v4 = vld [vmem:[#allocation2 + $0xf8] sm:$0xf0]  ;;  %v768_v5 = vld [vmem:[#allocation2 + $0xe0] sm:$0xf] }
   0xe   :  { %v940_v6 = vld [vmem:[#allocation2 + $0xec] sm:$0xf0]  ;;  %v781_v7 = vor.u32 %v939_v2, %v778_v4  ;;  %v938_v9 = vld [vmem:[#allocation2 + $0xe4] sm:$0xf]  ;;  %v770_v10 = vld [vmem:[#allocation2 + $0xf0] sm:$0xf0] }
   0xf   :  { %v769_v8 = vor.u32 %v940_v6, %v768_v5  ;;  %v760_v11 = vld [vmem:[#allocation2 + $0xc8] sm:$0xf]  ;;  %267 = vmatpush.bf16.msra.mxu2 %v777_v3  ;;  %v773_v12 = vor.u32 %v938_v9, %v770_v10  ;;  %v937_v13 = vld [vmem:[#allocation2 + $0xd4] sm:$0xf0]  ;;  %v935_v14 = vld [vmem:[#allocation2 + $0xcc] sm:$0xf] }
  0x10   :  { %v762_v15 = vld [vmem:[#allocation2 + $0xd8] sm:$0xf0]  ;;  %280 = vmatpush.bf16.msra.mxu3 %v781_v7  ;;  %v761_v16 = vor.u32 %v937_v13, %v760_v11  ;;  %v752_v18 = vld [vmem:[#allocation2 + $0xc0] sm:$0xf]  ;;  %v936_v19 = vld [vmem:[#allocation2 + $0xcc] sm:$0xf0] }
  0x11   :  { %241 = vmatpush.bf16.msra.mxu0 %v769_v8  ;;  %v765_v17 = vor.u32 %v935_v14, %v762_v15  ;;  %v934_v20 = vld [vmem:[#allocation2 + $0xc4] sm:$0xf]  ;;  %254 = vmatpush.bf16.msra.mxu1 %v773_v12  ;;  %v753_v21 = vor.u32 %v936_v19, %v752_v18  ;;  %v754_v22 = vld [vmem:[#allocation2 + $0xd0] sm:$0xf0]  ;;  %v744_v23 = vld [vmem:[#allocation2 + $0xa8] sm:$0xf] }
  0x12   :  { %v933_v24 = vld [vmem:[#allocation2 + $0xb4] sm:$0xf0]  ;;  %v757_v25 = vor.u32 %v934_v20, %v754_v22  ;;  %v931_v26 = vld [vmem:[#allocation2 + $0xac] sm:$0xf]  ;;  %v746_v27 = vld [vmem:[#allocation2 + $0xb8] sm:$0xf0] }
  0x13   :  { %v736_v28 = vld [vmem:[#allocation2 + $0xa0] sm:$0xf]  ;;  %268 = vmatpush.bf16.msra.mxu2 %v761_v16  ;;  %v745_v29 = vor.u32 %v933_v24, %v744_v23  ;;  %v932_v30 = vld [vmem:[#allocation2 + $0xac] sm:$0xf0]  ;;  %v930_v31 = vld [vmem:[#allocation2 + $0xa4] sm:$0xf]  ;;  %v749_v33 = vor.u32 %v931_v26, %v746_v27 }
  0x14   :  { %v738_v32 = vld [vmem:[#allocation2 + $0xb0] sm:$0xf0]  ;;  %281 = vmatpush.bf16.msra.mxu3 %v765_v17  ;;  %v737_v34 = vor.u32 %v932_v30, %v736_v28  ;;  %v728_v35 = vld [vmem:[#allocation2 + $0x88] sm:$0xf]  ;;  %v929_v36 = vld [vmem:[#allocation2 + $0x94] sm:$0xf0] }
  0x15   :  { %242 = vmatpush.bf16.msra.mxu0 %v753_v21  ;;  %v927_v37 = vld [vmem:[#allocation2 + $0x8c] sm:$0xf]  ;;  %255 = vmatpush.bf16.msra.mxu1 %v757_v25  ;;  %v741_v38 = vor.u32 %v930_v31, %v738_v32  ;;  %v730_v39 = vld [vmem:[#allocation2 + $0x98] sm:$0xf0]  ;;  %v720_v40 = vld [vmem:[#allocation2 + $0x80] sm:$0xf]  ;;  %v729_v44 = vor.u32 %v929_v36, %v728_v35 }
  0x16   :  { %v928_v41 = vld [vmem:[#allocation2 + $0x8c] sm:$0xf0]  ;;  %v926_v42 = vld [vmem:[#allocation2 + $0x84] sm:$0xf]  ;;  %v722_v43 = vld [vmem:[#allocation2 + $0x90] sm:$0xf0]  ;;  %v733_v45 = vor.u32 %v927_v37, %v730_v39 }
  0x17   :  { %269 = vmatpush.bf16.msra.mxu2 %v745_v29  ;;  %v721_v46 = vor.u32 %v928_v41, %v720_v40  ;;  %v712_v47 = vld [vmem:[#allocation2 + $0x68] sm:$0xf]  ;;  %v925_v48 = vld [vmem:[#allocation2 + $0x74] sm:$0xf0]  ;;  %v923_v49 = vld [vmem:[#allocation2 + $0x6c] sm:$0xf]  ;;  %v725_v50 = vor.u32 %v926_v42, %v722_v43 }
  0x18   :  { %282 = vmatpush.bf16.msra.mxu3 %v749_v33  ;;  %v714_v51 = vld [vmem:[#allocation2 + $0x78] sm:$0xf0]  ;;  %v704_v52 = vld [vmem:[#allocation2 + $0x60] sm:$0xf]  ;;  %v924_v53 = vld [vmem:[#allocation2 + $0x6c] sm:$0xf0]  ;;  %v713_v56 = vor.u32 %v925_v48, %v712_v47 }
  0x19   :  { %243 = vmatpush.bf16.msra.mxu0 %v737_v34  ;;  %256 = vmatpush.bf16.msra.mxu1 %v741_v38  ;;  %v922_v54 = vld [vmem:[#allocation2 + $0x64] sm:$0xf]  ;;  %v706_v55 = vld [vmem:[#allocation2 + $0x70] sm:$0xf0]  ;;  %v717_v57 = vor.u32 %v923_v49, %v714_v51  ;;  %v705_v58 = vor.u32 %v924_v53, %v704_v52  ;;  %v696_v59 = vld [vmem:[#allocation2 + $0x48] sm:$0xf] }
  0x1a   :  { %v921_v60 = vld [vmem:[#allocation2 + $0x54] sm:$0xf0]  ;;  %v919_v61 = vld [vmem:[#allocation2 + $0x4c] sm:$0xf]  ;;  %v709_v62 = vor.u32 %v922_v54, %v706_v55  ;;  %v698_v63 = vld [vmem:[#allocation2 + $0x58] sm:$0xf0] }
  0x1b   :  { %270 = vmatpush.bf16.msra.mxu2 %v729_v44  ;;  %v688_v0 = vld [vmem:[#allocation2 + $0x40] sm:$0xf]  ;;  %v920_v1 = vld [vmem:[#allocation2 + $0x4c] sm:$0xf0]  ;;  %v918_v2 = vld [vmem:[#allocation2 + $0x44] sm:$0xf]  ;;  %v697_v4 = vor.u32 %v921_v60, %v696_v59  ;;  %v701_v5 = vor.u32 %v919_v61, %v698_v63 }
  0x1c   :  { %283 = vmatpush.bf16.msra.mxu3 %v733_v45  ;;  %v690_v3 = vld [vmem:[#allocation2 + $0x50] sm:$0xf0]  ;;  %v689_v6 = vor.u32 %v920_v1, %v688_v0  ;;  %v680_v7 = vld [vmem:[#allocation2 + $0x28] sm:$0xf]  ;;  %v917_v8 = vld [vmem:[#allocation2 + $0x34] sm:$0xf0] }
  0x1d   :  { %244 = vmatpush.bf16.msra.mxu0 %v721_v46  ;;  %257 = vmatpush.bf16.msra.mxu1 %v725_v50  ;;  %v915_v9 = vld [vmem:[#allocation2 + $0x2c] sm:$0xf]  ;;  %v693_v10 = vor.u32 %v918_v2, %v690_v3  ;;  %v682_v11 = vld [vmem:[#allocation2 + $0x38] sm:$0xf0]  ;;  %v672_v12 = vld [vmem:[#allocation2 + $0x20] sm:$0xf]  ;;  %v681_v16 = vor.u32 %v917_v8, %v680_v7 }
  0x1e   :  { %v916_v13 = vld [vmem:[#allocation2 + $0x2c] sm:$0xf0]  ;;  %v914_v14 = vld [vmem:[#allocation2 + $0x24] sm:$0xf]  ;;  %v674_v15 = vld [vmem:[#allocation2 + $0x30] sm:$0xf0]  ;;  %v685_v17 = vor.u32 %v915_v9, %v682_v11 }
  0x1f   :  { %271 = vmatpush.bf16.msra.mxu2 %v713_v56  ;;  %v673_v18 = vor.u32 %v916_v13, %v672_v12  ;;  %v664_v19 = vld [vmem:[#allocation2 + $0x8] sm:$0xf]  ;;  %v913_v20 = vld [vmem:[#allocation2 + $0x14] sm:$0xf0]  ;;  %v911_v21 = vld [vmem:[#allocation2 + $0xc] sm:$0xf]  ;;  %v677_v22 = vor.u32 %v914_v14, %v674_v15 }
  0x20   :  { %284 = vmatpush.bf16.msra.mxu3 %v717_v57  ;;  %v666_v23 = vld [vmem:[#allocation2 + $0x18] sm:$0xf0]  ;;  %v656_v24 = vld [vmem:[#allocation2] sm:$0xf]  ;;  %v912_v25 = vld [vmem:[#allocation2 + $0xc] sm:$0xf0]  ;;  %v665_v28 = vor.u32 %v913_v20, %v664_v19  ;;  %v609_v20 = vlaneseq }
  0x21   :  { %245 = vmatpush.bf16.msra.mxu0 %v705_v58  ;;  %258 = vmatpush.bf16.msra.mxu1 %v709_v62  ;;  %v910_v26 = vld [vmem:[#allocation2 + $0x4] sm:$0xf]  ;;  %v658_v27 = vld [vmem:[#allocation2 + $0x10] sm:$0xf0]  ;;  %v669_v30 = vor.u32 %v911_v21, %v666_v23  ;;  %v657_v31 = vor.u32 %v912_v25, %v656_v24  ;;  %v949_v33 = vld [vmem:[#allocation5 + $0x38] sm:$0xff]  ;;  %s643_s29 = sshll.u32 %s1105_s3, 4  ;;  %s644_s29 = int_to_ptr.hbm [resolvable:$true] %s643_s29 }
  0x22   :  { %v47_v29 = vld [vmem:[%s1102_s0] sm:$0xff]  ;;  %v661_v32 = vor.u32 %v910_v26, %v658_v27  ;;  %v957_v35 = vld [vmem:[#allocation5 + $0x78] sm:$0xff]  ;;  %v948_v37 = vld [vmem:[#allocation5 + $0x30] sm:$0xff]  ;;  %v610_v24 = vand.u32 127, %v609_v20  ;;  %s1069_s0 = smov [#allocation7]  }
  0x23   :  { %272 = vmatpush.bf16.msra.mxu2 %v697_v4  ;;  %v48_v34 = vpack.c.bf16 %v47_v29, %v47_v29  ;;  %v965_v36 = vld [vmem:[#allocation5 + $0xb8] sm:$0xff]  ;;  %v956_v39 = vld [vmem:[#allocation5 + $0x70] sm:$0xff]  ;;  %v947_v41 = vld [vmem:[#allocation5 + $0x28] sm:$0xff]  ;;  %s641_s26 = sshll.u32 %s1069_s0, 4  ;;  %s642_s26 = int_to_ptr.vmem [resolvable:$true] %s641_s26 }
  0x24   :  { %285 = vmatpush.bf16.msra.mxu3 %v701_v5  ;;  %v973_v38 = vld [vmem:[#allocation5 + $0xf8] sm:$0xff]  ;;  %v964_v40 = vld [vmem:[#allocation5 + $0xb0] sm:$0xff]  ;;  %v955_v43 = vld [vmem:[#allocation5 + $0x68] sm:$0xff]  ;;  %vm611_vm0 = vcmp.lt.s32.totalorder %v610_v24, 64 }
  0x25   :  { %246 = vmatpush.bf16.msra.mxu0 %v689_v6  ;;  %259 = vmatpush.bf16.msra.mxu1 %v693_v10  ;;  %v972_v42 = vld [vmem:[#allocation5 + $0xf0] sm:$0xff]  ;;  %v963_v44 = vld [vmem:[#allocation5 + $0xa8] sm:$0xff]  ;;  %v946_v45 = vld [vmem:[#allocation5 + $0x20] sm:$0xff] }
  0x26   :  { %v971_v46 = vld [vmem:[#allocation5 + $0xe8] sm:$0xff]  ;;  %v954_v47 = vld [vmem:[#allocation5 + $0x60] sm:$0xff]  ;;  %v945_v49 = vld [vmem:[#allocation5 + $0x18] sm:$0xff] }
  0x27   :  { %273 = vmatpush.bf16.msra.mxu2 %v681_v16  ;;  %v962_v48 = vld [vmem:[#allocation5 + $0xa0] sm:$0xff]  ;;  %v953_v51 = vld [vmem:[#allocation5 + $0x58] sm:$0xff]  ;;  %v944_v53 = vld [vmem:[#allocation5 + $0x10] sm:$0xff] }
  0x28   :  { %286 = vmatpush.bf16.msra.mxu3 %v685_v17  ;;  %v970_v50 = vld [vmem:[#allocation5 + $0xe0] sm:$0xff]  ;;  %v961_v52 = vld [vmem:[#allocation5 + $0x98] sm:$0xff]  ;;  %v952_v55 = vld [vmem:[#allocation5 + $0x50] sm:$0xff] }
  0x29   :  { %247 = vmatpush.bf16.msra.mxu0 %v673_v18  ;;  %260 = vmatpush.bf16.msra.mxu1 %v677_v22  ;;  %v969_v54 = vld [vmem:[#allocation5 + $0xd8] sm:$0xff]  ;;  %v960_v56 = vld [vmem:[#allocation5 + $0x90] sm:$0xff]  ;;  %v943_v57 = vld [vmem:[#allocation5 + $0x8] sm:$0xff] }
  0x2a   :  { %v968_v58 = vld [vmem:[#allocation5 + $0xd0] sm:$0xff]  ;;  %v951_v59 = vld [vmem:[#allocation5 + $0x48] sm:$0xff]  ;;  %v942_v60 = vld [vmem:[#allocation5] sm:$0xff] }
  0x2b   :  { %274 = vmatpush.bf16.msra.mxu2 %v665_v28  ;;  %v950_v61 = vld [vmem:[#allocation5 + $0x40] sm:$0xff]  ;;  %v959_v62 = vld [vmem:[#allocation5 + $0x88] sm:$0xff] }
  0x2c   :  { %287 = vmatpush.bf16.msra.mxu3 %v669_v30  ;;  %v967_v63 = vld [vmem:[#allocation5 + $0xc8] sm:$0xff]  ;;  %v958_v0 = vld [vmem:[#allocation5 + $0x80] sm:$0xff] }
  0x2d   :  { %248 = vmatpush.bf16.msra.mxu0 %v657_v31  ;;  %261 = vmatpush.bf16.msra.mxu1 %v661_v32  ;;  %v966_v1 = vld [vmem:[#allocation5 + $0xc0] sm:$0xff] }
  0x2e   :  { %275 = vmatmul.bf16.vlgmr.msra.gmra.mxu2 %v48_v34 }
  0x2f   :  { %288 = vmatmul.bf16.vlgmr.msra.gmra.mxu3 %v48_v34  ;;  %583 = vmatpush.bf16.msrb.mxu2 %v965_v36 }
  0x30   :  { %249 = vmatmul.bf16.vlgmr.msra.gmra.mxu0 %v48_v34  ;;  %262 = vmatmul.bf16.vlgmr.msra.gmra.mxu1 %v48_v34 }
  0x31   :  { %557 = vmatpush.bf16.msrb.mxu0 %v949_v33  ;;  %570 = vmatpush.bf16.msrb.mxu1 %v957_v35 }
  0x32   :  { %596 = vmatpush.bf16.msrb.mxu3 %v973_v38 }
  0x33   :  { %584 = vmatpush.bf16.msrb.mxu2 %v964_v40 }
  0x35   :  { %558 = vmatpush.bf16.msrb.mxu0 %v948_v37  ;;  %571 = vmatpush.bf16.msrb.mxu1 %v956_v39 }
  0x36   :  { %597 = vmatpush.bf16.msrb.mxu3 %v972_v42 }
  0x37   :  { %585 = vmatpush.bf16.msrb.mxu2 %v963_v44 }
  0x39   :  { %559 = vmatpush.bf16.msrb.mxu0 %v947_v41  ;;  %572 = vmatpush.bf16.msrb.mxu1 %v955_v43 }
  0x3a   :  { %598 = vmatpush.bf16.msrb.mxu3 %v971_v46 }
  0x3b   :  { %586 = vmatpush.bf16.msrb.mxu2 %v962_v48 }
  0x3d   :  { %560 = vmatpush.bf16.msrb.mxu0 %v946_v45  ;;  %573 = vmatpush.bf16.msrb.mxu1 %v954_v47 }
  0x3e   :  { %599 = vmatpush.bf16.msrb.mxu3 %v970_v50 }
  0x3f   :  { %587 = vmatpush.bf16.msrb.mxu2 %v961_v52 }
  0x41   :  { %561 = vmatpush.bf16.msrb.mxu0 %v945_v49  ;;  %574 = vmatpush.bf16.msrb.mxu1 %v953_v51 }
  0x42   :  { %600 = vmatpush.bf16.msrb.mxu3 %v969_v54 }
  0x43   :  { %588 = vmatpush.bf16.msrb.mxu2 %v960_v56 }
  0x45   :  { %562 = vmatpush.bf16.msrb.mxu0 %v944_v53  ;;  %575 = vmatpush.bf16.msrb.mxu1 %v952_v55 }
  0x46   :  { %601 = vmatpush.bf16.msrb.mxu3 %v968_v58 }
  0x47   :  { %589 = vmatpush.bf16.msrb.mxu2 %v959_v62 }
  0x49   :  { %563 = vmatpush.bf16.msrb.mxu0 %v943_v57  ;;  %576 = vmatpush.bf16.msrb.mxu1 %v951_v59 }
  0x4a   :  { %602 = vmatpush.bf16.msrb.mxu3 %v967_v63 }
  0x4b   :  { %590 = vmatpush.bf16.msrb.mxu2 %v958_v0 }
  0x4d   :  { %564 = vmatpush.bf16.msrb.mxu0 %v942_v60  ;;  %577 = vmatpush.bf16.msrb.mxu1 %v950_v61 }
  0x4e   :  { %603 = vmatpush.bf16.msrb.mxu3 %v966_v1 }
  0xad   :  { %v250_v2 = vpop.f32.mrf.mxu0  ;;  %v263_v4 = vpop.f32.mrf.mxu1 }
  0xae   :  { %v293_v3 = vmax.f32 %v250_v2, 0.0  ;;  %v294_v5 = vmax.f32 %v263_v4, 0.0 }
  0xb0   :  { %v297_v6 = vpack.c.bf16 %v293_v3, %v293_v3  ;;  %v298_v7 = vpack.c.bf16 %v294_v5, %v294_v5 }
  0xb1   :  { %v276_v8 = vpop.f32.mrf.mxu2 }
  0xb2   :  { %565 = vmatmul.bf16.vlgmr.msrb.gmra.mxu0 %v297_v6  ;;  %v295_v9 = vmax.f32 %v276_v8, 0.0  ;;  %v289_v10 = vpop.f32.mrf.mxu3  ;;  %578 = vmatmul.bf16.vlgmr.msrb.gmra.mxu1 %v298_v7 }
  0xb3   :  { %v296_v11 = vmax.f32 %v289_v10, 0.0 }
  0xb4   :  { %v299_v12 = vpack.c.bf16 %v295_v9, %v295_v9 }
  0xb5   :  { %v252_v13 = vpop.f32.mrf.mxu0  ;;  %v300_v14 = vpack.c.bf16 %v296_v11, %v296_v11  ;;  %v265_v15 = vpop.f32.mrf.mxu1 }
  0xb6   :  { %591 = vmatmul.bf16.vlgmr.msrb.gmra.mxu2 %v299_v12 }
  0xb7   :  { %604 = vmatmul.bf16.vlgmr.msrb.gmra.mxu3 %v300_v14 }
  0xb9   :  { %v278_v16 = vpop.f32.mrf.mxu2 }
  0xba   :  { %v291_v17 = vpop.f32.mrf.mxu3 }
 0x12f   :  { %v566_v18 = vpop.f32.mrf.mxu0  ;;  %v579_v19 = vpop.f32.mrf.mxu1 }
 0x130   :  { %v580_v21 = vadd.f32 %v579_v19, %v566_v18 }
 0x137   :  { %v568_v22 = vpop.f32.mrf.mxu0  ;;  %v581_v23 = vpop.f32.mrf.mxu1 }
 0x139   :  { %v592_v25 = vpop.f32.mrf.mxu2 }
 0x13a   :  { %v593_v26 = vadd.f32 %v592_v25, %v580_v21  ;;  %v605_v27 = vpop.f32.mrf.mxu3 }
 0x13c   :  { %v606_v28 = vadd.f32 %v605_v27, %v593_v26 }
 0x13e   :  { %v612_v29 = vsel %vm611_vm0, %v606_v28, -1e+30 }
 0x13f   :  { %613 = vmax.xlane.f32.xlu0 %v612_v29 }
 0x141   :  { %v594_v30 = vpop.f32.mrf.mxu2 }
 0x142   :  { %v607_v31 = vpop.f32.mrf.mxu3 }
 0x1b2   :  { %v614_v32 = vpop.xlane.xlu0 %613 }
 0x1b3   :  { %v615_v33 = vsub.f32 %v612_v29, %v614_v32 }
 0x1b5   :  { %v616_v34 = vmul.f32 1.442695, %v615_v33 }
 0x1b7   :  { %981 = vpow2.f32 %v616_v34 }
 0x1bd   :  { %v982_v35 = vpop.eup %981 }
 0x1be   :  { %618 = vadd.xlane.f32.xlu0 %v982_v35 }
 0x231   :  { %v619_v36 = vpop.xlane.xlu0 %618 }
 0x232   :  { %983 = vrcp.f32 %v619_v36  ;;  %v631_v40 = vand.u32 2147483648, %v619_v36  ;;  %v629_v42 = vand.u32 2147483647, %v619_v36  ;;  %vm625_vm2 = vweird.f32 %v619_v36 }
 0x234   :  { %v632_v44 = vor.u32 1.1754944e-38, %v631_v40  ;;  %vm630_vm4 = vcmp.eq.f32.partialorder %v629_v42, 8.507059e+37 }
 0x238   :  { %v984_v37 = vpop.eup %983 }
 0x239   :  { %v621_v38 = vmul.f32 %v984_v37, %v619_v36  ;;  %vm626_vm1 = vweird.f32 %v984_v37 }
 0x23a   :  { %vm627_vm3 = vmor %vm625_vm2, %vm626_vm1 }
 0x23b   :  { %v622_v39 = vsub.f32 1.0, %v621_v38 }
 0x23d   :  { %v623_v41 = vmul.f32 %v984_v37, %v622_v39 }
 0x23f   :  { %v624_v43 = vadd.f32 %v984_v37, %v623_v41 }
 0x241   :  { %v628_v45 = vsel %vm627_vm3, %v984_v37, %v624_v43 }
 0x242   :  { %v633_v46 = vsel %vm630_vm4, %v632_v44, %v628_v45 }
 0x243   :  { %v634_v47 = vmul.f32 %v982_v35, %v633_v46 }
 0x245   :  { %635 = vst [vmem:[#allocation7] sm:$0xff] %v634_v47 }
 0x246   :  { %646 = dma.vmem_to_hbm [thread:$0]  %s642_s26, 128, %s644_s29, [#allocation4]  }
 0x247   :  { %1061 = dma.done.wait [#allocation4], 128  }
 0x248   :  { %1062 = vsyncadd [#allocation4], 4294967168 }
 0x249   :  { %651 = vsyncpa [#allocation3], 1 }
 0x24a   :  { %652 = vsyncpa [#allocation6], 1 }
 0x24b   :  { %653 = vsyncpa [#allocation4], 1 }

// kernel: attention_net_forward_seq.3
= control target key start
LH: loop header
LB: loop body
LE: loop exit
PB: predicated region body
PF: predicated region fallthrough
CT: control target
= control target key end

     0   :  { %15 = vsyncpa [#allocation3], 0  ;;  %s3093_s0 = inlined_call_operand.vmem [shape: f32[8,32], index: 0, kind: input, shape index: {}]   ;;  %s3094_s1 = inlined_call_operand.hbm [shape: bf16[32,64], index: 1, kind: input, shape index: {}]   ;;  %s3095_s2 = inlined_call_operand.hbm [shape: bf16[64,64], index: 2, kind: input, shape index: {}]   ;;  %s3096_s3 = inlined_call_operand.hbm [shape: bf16[64,128], index: 3, kind: input, shape index: {}]   ;;  %s3097_s4 = inlined_call_operand.hbm [shape: bf16[128,128], index: 4, kind: input, shape index: {}]   ;;  %s3098_s5 = inlined_call_operand.hbm [shape: bf16[128,256], index: 5, kind: input, shape index: {}]   ;;  %s3099_s6 = inlined_call_operand.hbm [shape: bf16[256,256], index: 6, kind: input, shape index: {}]   ;;  %s3100_s7 = inlined_call_operand.hbm [shape: bf16[256,512], index: 7, kind: input, shape index: {}]   ;;  %s3101_s8 = inlined_call_operand.hbm [shape: bf16[512,128], index: 8, kind: input, shape index: {}]   ;;  %s3102_s9 = inlined_call_operand.hbm [shape: bf16[128,384], index: 9, kind: input, shape index: {}]   ;;  %s3103_s10 = inlined_call_operand.vmem [shape: f32[8,384], index: 10, kind: output, shape index: {}]  }
   0x1   :  { %16 = vsyncpa [#allocation5], 0 }
   0x2   :  { %17 = vsyncpa [#allocation8], 0 }
   0x3   :  { %18 = vsyncpa [#allocation11], 0 }
   0x4   :  { %19 = vsyncpa [#allocation14], 0  ;;  %s39_s15 = sshll.u32 %s3095_s2, 4  ;;  %s2959_s16 = smov [#allocation4]   ;;  %s40_s15 = int_to_ptr.hbm [resolvable:$true] %s39_s15 }
   0x5   :  { %s41_s17 = sshll.u32 %s2959_s16, 4  ;;  %s65_s20 = sshll.u32 %s3097_s4, 4  ;;  %s42_s17 = int_to_ptr.vmem [resolvable:$true] %s41_s17  ;;  %s66_s20 = int_to_ptr.hbm [resolvable:$true] %s65_s20 }
   0x6   :  { %s2960_s21 = smov 64   ;;  %s2961_s22 = smov 4  }
   0x7   :  { %47 = dma.hbm_to_vmem [thread:$0]  %s40_s15, 512, %s42_s17, [#allocation5], %s2960_s21, %s2960_s21, %s2961_s22  }
   0x8   :  { %s2962_s23 = smov [#allocation7]   ;;  %s91_s26 = sshll.u32 %s3099_s6, 4  ;;  %s92_s26 = int_to_ptr.hbm [resolvable:$true] %s91_s26 }
   0x9   :  { %s67_s24 = sshll.u32 %s2962_s23, 4  ;;  %s2963_s4 = smov [#allocation10]   ;;  %s68_s24 = int_to_ptr.vmem [resolvable:$true] %s67_s24 }
   0xa   :  { %73 = dma.hbm_to_vmem [thread:$0]  %s66_s20, 1024, %s68_s24, [#allocation8], %s2960_s21, %s2960_s21, %s2961_s22  }
   0xb   :  { %s93_s27 = sshll.u32 %s2963_s4, 4  ;;  %s117_s30 = sshll.u32 %s3101_s8, 4  ;;  %s94_s27 = int_to_ptr.vmem [resolvable:$true] %s93_s27  ;;  %s118_s30 = int_to_ptr.hbm [resolvable:$true] %s117_s30 }
   0xc   :  { %s2964_s11 = smov 128   ;;  %s2965_s12 = smov 8  }
   0xd   :  { %99 = dma.hbm_to_vmem [thread:$0]  %s92_s26, 4096, %s94_s27, [#allocation11], %s2964_s11, %s2964_s11, %s2965_s12  }
   0xe   :  { %s2966_s13 = smov [#allocation13]   ;;  %s26_s6 = sshll.u32 %s3094_s1, 4  ;;  %s27_s6 = int_to_ptr.hbm [resolvable:$true] %s26_s6 }
   0xf   :  { %s119_s14 = sshll.u32 %s2966_s13, 4  ;;  %s52_s18 = sshll.u32 %s3096_s3, 4  ;;  %s120_s14 = int_to_ptr.vmem [resolvable:$true] %s119_s14  ;;  %s53_s18 = int_to_ptr.hbm [resolvable:$true] %s52_s18 }
  0x10   :  { %125 = dma.hbm_to_vmem [thread:$0]  %s118_s30, 4096, %s120_s14, [#allocation14], %s2960_s21, %s2960_s21, %s2961_s22  }
  0x11   :  { %s2967_s19 = smov [#allocation2]   ;;  %s2968_s23 = smov [#allocation6]  }
  0x12   :  { %s28_s20 = sshll.u32 %s2967_s19, 4  ;;  %s54_s1 = sshll.u32 %s2968_s23, 4  ;;  %s29_s20 = int_to_ptr.vmem [resolvable:$true] %s28_s20  ;;  %s55_s1 = int_to_ptr.vmem [resolvable:$true] %s54_s1 }
  0x13   :  { %34 = dma.hbm_to_vmem [thread:$0]  %s27_s6, 256, %s29_s20, [#allocation3], %s2960_s21, %s2960_s21, %s2961_s22  }
  0x14   :  { %s78_s25 = sshll.u32 %s3098_s5, 4  ;;  %s104_s4 = sshll.u32 %s3100_s7, 4  ;;  %s79_s25 = int_to_ptr.hbm [resolvable:$true] %s78_s25  ;;  %s105_s4 = int_to_ptr.hbm [resolvable:$true] %s104_s4 }
  0x15   :  { %60 = dma.hbm_to_vmem [thread:$0]  %s53_s18, 512, %s55_s1, [#allocation5], %s2960_s21, %s2960_s21, %s2961_s22  }
  0x16   :  { %s2969_s27 = smov [#allocation9]   ;;  %s2970_s29 = smov [#allocation12]  }
  0x17   :  { %s80_s28 = sshll.u32 %s2969_s27, 4  ;;  %s106_s5 = sshll.u32 %s2970_s29, 4  ;;  %s81_s28 = int_to_ptr.vmem [resolvable:$true] %s80_s28  ;;  %s107_s5 = int_to_ptr.vmem [resolvable:$true] %s106_s5 }
  0x18   :  { %86 = dma.hbm_to_vmem [thread:$0]  %s79_s25, 2048, %s81_s28, [#allocation8], %s2964_s11, %s2964_s11, %s2965_s12  }
  0x19   :  { %s2971_s30 = smov 256   ;;  %s2972_s13 = smov 16  }
  0x1a   :  { %112 = dma.hbm_to_vmem [thread:$0]  %s105_s4, 8192, %s107_s5, [#allocation11], %s2971_s30, %s2971_s30, %s2972_s13  }
  0x1b   :  { %s130_s22 = sshll.u32 %s3102_s9, 4  ;;  %s2973_s7 = smov [#allocation15]   ;;  %s131_s22 = int_to_ptr.hbm [resolvable:$true] %s130_s22 }
  0x1c   :  { %s132_s15 = sshll.u32 %s2973_s7, 4  ;;  %s2974_s16 = smov 192   ;;  %s133_s15 = int_to_ptr.vmem [resolvable:$true] %s132_s15 }
  0x1d   :  { %s2975_s6 = smov 12  }
  0x1e   :  { %138 = dma.hbm_to_vmem [thread:$0]  %s131_s22, 3072, %s133_s15, [#allocation14], %s2974_s16, %s2974_s16, %s2975_s6  }
  0x1f   :  { %2949 = dma.done.wait [#allocation3], 256  }
  0x20   :  { %2950 = vsyncadd [#allocation3], 4294967040 }
  0x21   :  { %2951 = dma.done.wait [#allocation5], 1024  }
  0x22   :  { %2952 = vsyncadd [#allocation5], 4294966272 }
  0x23   :  { %2953 = dma.done.wait [#allocation8], 3072  }
  0x24   :  { %2954 = vsyncadd [#allocation8], 4294964224 }
  0x25   :  { %2955 = dma.done.wait [#allocation11], 12288  }
  0x26   :  { %2956 = vsyncadd [#allocation11], 4294955008 }
  0x27   :  { %2957 = dma.done.wait [#allocation14], 7168  }
  0x28   :  { %2958 = vsyncadd [#allocation14], 4294960128  ;;  %v2531_v0 = vld [vmem:[#allocation2 + $0x8] sm:$0xff]  ;;  %v2530_v1 = vld [vmem:[#allocation2] sm:$0xff]  ;;  %vm194_vm0 = vcmask 261120   ;;  %vm245_vm1 = vcmask 523264  }
  0x29   :  { %204 = vmatpush.bf16.msra.mxu1 %v2531_v0  ;;  %v176_v2 = vld [vmem:[%s3093_s0] sm:$0xff]  ;;  %v2535_v3 = vld [vmem:[#allocation4 + $0x18] sm:$0xff]  ;;  %v2533_v6 = vld [vmem:[#allocation4 + $0x8] sm:$0xff] }
  0x2a   :  { %v177_v4 = vpack.c.bf16 %v176_v2, %v176_v2  ;;  %v2534_v5 = vld [vmem:[#allocation4 + $0x10] sm:$0xff]  ;;  %v2532_v7 = vld [vmem:[#allocation4] sm:$0xff]  ;;  %v2539_v8 = vld [vmem:[#allocation6 + $0x18] sm:$0xff] }
  0x2b   :  { %303 = vmatpush.bf16.msra.mxu2 %v2539_v8  ;;  %v2538_v9 = vld [vmem:[#allocation6 + $0x10] sm:$0xff]  ;;  %v2537_v10 = vld [vmem:[#allocation6 + $0x8] sm:$0xff]  ;;  %v2536_v15 = vld [vmem:[#allocation6] sm:$0xff] }
  0x2c   :  { %v2547_v16 = vld [vmem:[#allocation7 + $0x38] sm:$0xff]  ;;  %v2546_v17 = vld [vmem:[#allocation7 + $0x30] sm:$0xff]  ;;  %v2545_v18 = vld [vmem:[#allocation7 + $0x28] sm:$0xff] }
  0x2d   :  { %205 = vmatpush.bf16.msra.mxu1 %v2530_v1  ;;  %378 = vmatpush.bf16.msra.mxu3 %v2547_v16  ;;  %v2544_v19 = vld [vmem:[#allocation7 + $0x20] sm:$0xff]  ;;  %v2543_v20 = vld [vmem:[#allocation7 + $0x18] sm:$0xff]  ;;  %v2542_v21 = vld [vmem:[#allocation7 + $0x10] sm:$0xff] }
  0x2e   :  { %v2541_v22 = vld [vmem:[#allocation7 + $0x8] sm:$0xff]  ;;  %v2540_v27 = vld [vmem:[#allocation7] sm:$0xff]  ;;  %v1916_v28 = vld [vmem:[#allocation9 + $0x70] sm:$0xf] }
  0x2f   :  { %304 = vmatpush.bf16.msra.mxu2 %v2538_v9  ;;  %v2563_v29 = vld [vmem:[#allocation9 + $0x74] sm:$0xf0]  ;;  %v2562_v30 = vld [vmem:[#allocation9 + $0x74] sm:$0xf]  ;;  %v1918_v32 = vld [vmem:[#allocation9 + $0x78] sm:$0xf0] }
  0x30   :  { %1791 = vmatmul.msk.bf16.vlgmr.msra.gmra.mxu1 %vm194_vm0, %v177_v4  ;;  %v1917_v31 = vor.u32 %v2563_v29, %v1916_v28  ;;  %v1908_v33 = vld [vmem:[#allocation9 + $0x60] sm:$0xf]  ;;  %v2561_v34 = vld [vmem:[#allocation9 + $0x64] sm:$0xf0]  ;;  %v1921_v35 = vor.u32 %v2562_v30, %v1918_v32  ;;  %v2560_v36 = vld [vmem:[#allocation9 + $0x64] sm:$0xf] }
  0x31   :  { %253 = vmatpush.bf16.msrb.mxu1 %v2535_v3  ;;  %379 = vmatpush.bf16.msra.mxu3 %v2546_v17  ;;  %v1910_v37 = vld [vmem:[#allocation9 + $0x68] sm:$0xf0]  ;;  %v1909_v38 = vor.u32 %v2561_v34, %v1908_v33  ;;  %v1900_v40 = vld [vmem:[#allocation9 + $0x50] sm:$0xf]  ;;  %v2559_v41 = vld [vmem:[#allocation9 + $0x54] sm:$0xf0] }
  0x32   :  { %489 = vmatpush.bf16.msra.mxu0 %v1917_v31  ;;  %v1913_v39 = vor.u32 %v2560_v36, %v1910_v37  ;;  %v2558_v42 = vld [vmem:[#allocation9 + $0x54] sm:$0xf]  ;;  %v1902_v43 = vld [vmem:[#allocation9 + $0x58] sm:$0xf0]  ;;  %v1901_v44 = vor.u32 %v2559_v41, %v1900_v40  ;;  %v1892_v46 = vld [vmem:[#allocation9 + $0x40] sm:$0xf] }
  0x33   :  { %305 = vmatpush.bf16.msra.mxu2 %v2537_v10  ;;  %v1905_v45 = vor.u32 %v2558_v42, %v1902_v43  ;;  %v2557_v47 = vld [vmem:[#allocation9 + $0x44] sm:$0xf0]  ;;  %v2556_v48 = vld [vmem:[#allocation9 + $0x44] sm:$0xf]  ;;  %v1894_v49 = vld [vmem:[#allocation9 + $0x48] sm:$0xf0] }
  0x34   :  { %v1893_v50 = vor.u32 %v2557_v47, %v1892_v46  ;;  %v1897_v51 = vor.u32 %v2556_v48, %v1894_v49  ;;  %v1884_v52 = vld [vmem:[#allocation9 + $0x30] sm:$0xf]  ;;  %v2555_v53 = vld [vmem:[#allocation9 + $0x34] sm:$0xf0]  ;;  %v2554_v54 = vld [vmem:[#allocation9 + $0x34] sm:$0xf] }
  0x35   :  { %254 = vmatpush.bf16.msrb.mxu1 %v2534_v5  ;;  %380 = vmatpush.bf16.msra.mxu3 %v2545_v18  ;;  %v1886_v55 = vld [vmem:[#allocation9 + $0x38] sm:$0xf0]  ;;  %v1885_v56 = vor.u32 %v2555_v53, %v1884_v52  ;;  %v1876_v58 = vld [vmem:[#allocation9 + $0x20] sm:$0xf]  ;;  %v2553_v59 = vld [vmem:[#allocation9 + $0x24] sm:$0xf0] }
  0x36   :  { %490 = vmatpush.bf16.msra.mxu0 %v1909_v38  ;;  %v1889_v57 = vor.u32 %v2554_v54, %v1886_v55  ;;  %v2552_v60 = vld [vmem:[#allocation9 + $0x24] sm:$0xf]  ;;  %v1878_v61 = vld [vmem:[#allocation9 + $0x28] sm:$0xf0]  ;;  %v1877_v62 = vor.u32 %v2553_v59, %v1876_v58  ;;  %v1868_v0 = vld [vmem:[#allocation9 + $0x10] sm:$0xf] }
  0x37   :  { %306 = vmatpush.bf16.msra.mxu2 %v2536_v15  ;;  %v1881_v63 = vor.u32 %v2552_v60, %v1878_v61  ;;  %v2551_v1 = vld [vmem:[#allocation9 + $0x14] sm:$0xf0]  ;;  %v2550_v2 = vld [vmem:[#allocation9 + $0x14] sm:$0xf]  ;;  %v1870_v3 = vld [vmem:[#allocation9 + $0x18] sm:$0xf0] }
  0x38   :  { %v1869_v4 = vor.u32 %v2551_v1, %v1868_v0  ;;  %v1860_v10 = vld [vmem:[#allocation9] sm:$0xf]  ;;  %v1980_v16 = vld [vmem:[#allocation10 + $0x70] sm:$0xf]  ;;  %v2579_v17 = vld [vmem:[#allocation10 + $0x74] sm:$0xf0] }
  0x39   :  { %255 = vmatpush.bf16.msrb.mxu1 %v2533_v6  ;;  %381 = vmatpush.bf16.msra.mxu3 %v2544_v19  ;;  %v1873_v6 = vor.u32 %v2550_v2, %v1870_v3  ;;  %v2044_v18 = vld [vmem:[#allocation10 + $0xf0] sm:$0xf]  ;;  %v1981_v19 = vor.u32 %v2579_v17, %v1980_v16  ;;  %v2577_v29 = vld [vmem:[#allocation10 + $0x64] sm:$0xf0]  ;;  %v2036_v30 = vld [vmem:[#allocation10 + $0xe0] sm:$0xf] }
  0x3a   :  { %491 = vmatpush.bf16.msra.mxu0 %v1901_v44  ;;  %v2593_v31 = vld [vmem:[#allocation10 + $0xe4] sm:$0xf0]  ;;  %v2576_v34 = vld [vmem:[#allocation10 + $0x64] sm:$0xf]  ;;  %v2038_v38 = vld [vmem:[#allocation10 + $0xe8] sm:$0xf0] }
  0x3b   :  { %711 = vmatpush.bf16.msrb.mxu2 %v1981_v19  ;;  %v2037_v33 = vor.u32 %v2593_v31, %v2036_v30  ;;  %v2592_v36 = vld [vmem:[#allocation10 + $0xe4] sm:$0xf]  ;;  %v2575_v40 = vld [vmem:[#allocation10 + $0x54] sm:$0xf0]  ;;  %v2028_v42 = vld [vmem:[#allocation10 + $0xd0] sm:$0xf] }
  0x3c   :  { %v2041_v41 = vor.u32 %v2592_v36, %v2038_v38  ;;  %v2591_v43 = vld [vmem:[#allocation10 + $0xd4] sm:$0xf0]  ;;  %v2574_v44 = vld [vmem:[#allocation10 + $0x54] sm:$0xf]  ;;  %v1966_v46 = vld [vmem:[#allocation10 + $0x58] sm:$0xf0] }
  0x3d   :  { %256 = vmatpush.bf16.msrb.mxu1 %v2532_v7  ;;  %382 = vmatpush.bf16.msra.mxu3 %v2543_v20  ;;  %v2595_v20 = vld [vmem:[#allocation10 + $0xf4] sm:$0xf0]  ;;  %v2590_v47 = vld [vmem:[#allocation10 + $0xd4] sm:$0xf]  ;;  %v2030_v48 = vld [vmem:[#allocation10 + $0xd8] sm:$0xf0]  ;;  %v2029_v49 = vor.u32 %v2591_v43, %v2028_v42 }
  0x3e   :  { %492 = vmatpush.bf16.msra.mxu0 %v1893_v50  ;;  %v1969_v50 = vor.u32 %v2574_v44, %v1966_v46  ;;  %v2573_v52 = vld [vmem:[#allocation10 + $0x44] sm:$0xf0]  ;;  %v2020_v53 = vld [vmem:[#allocation10 + $0xc0] sm:$0xf]  ;;  %v2033_v54 = vor.u32 %v2590_v47, %v2030_v48  ;;  %v2588_v58 = vld [vmem:[#allocation10 + $0xc4] sm:$0xf] }
  0x3f   :  { %v2589_v55 = vld [vmem:[#allocation10 + $0xc4] sm:$0xf0]  ;;  %v2022_v59 = vld [vmem:[#allocation10 + $0xc8] sm:$0xf0]  ;;  %v2571_v0 = vld [vmem:[#allocation10 + $0x34] sm:$0xf0] }
  0x40   :  { %v2021_v61 = vor.u32 %v2589_v55, %v2020_v53  ;;  %v2012_v1 = vld [vmem:[#allocation10 + $0xb0] sm:$0xf]  ;;  %v2025_v2 = vor.u32 %v2588_v58, %v2022_v59  ;;  %v2587_v3 = vld [vmem:[#allocation10 + $0xb4] sm:$0xf0]  ;;  %v2568_v16 = vld [vmem:[#allocation10 + $0x24] sm:$0xf] }
  0x41   :  { %383 = vmatpush.bf16.msra.mxu3 %v2542_v21  ;;  %502 = vmatpush.bf16.msra.mxu1 %v1921_v35  ;;  %v2578_v21 = vld [vmem:[#allocation10 + $0x74] sm:$0xf]  ;;  %v1974_v35 = vld [vmem:[#allocation10 + $0x68] sm:$0xf0]  ;;  %v1988_v42 = vld [vmem:[#allocation10 + $0x80] sm:$0xf] }
  0x42   :  { %493 = vmatpush.bf16.msra.mxu0 %v1885_v56  ;;  %v1977_v37 = vor.u32 %v2576_v34, %v1974_v35  ;;  %v2572_v56 = vld [vmem:[#allocation10 + $0x44] sm:$0xf]  ;;  %v1942_v17 = vld [vmem:[#allocation10 + $0x28] sm:$0xf0]  ;;  %v2582_v31 = vld [vmem:[#allocation10 + $0x94] sm:$0xf] }
  0x43   :  { %v2006_v19 = vld [vmem:[#allocation10 + $0xa8] sm:$0xf0]  ;;  %v2581_v44 = vld [vmem:[#allocation10 + $0x84] sm:$0xf0]  ;;  %v2658_v53 = vld [vmem:[#allocation12 + $0x1ec] sm:$0xf0] }
  0x44   :  { %v1926_v46 = vld [vmem:[#allocation10 + $0x8] sm:$0xf0]  ;;  %v1989_v47 = vor.u32 %v2581_v44, %v1988_v42  ;;  %v2654_v58 = vld [vmem:[#allocation12 + $0x1cc] sm:$0xf0]  ;;  %v2102_v44 = vld [vmem:[#allocation12 + $0x70] sm:$0xf0] }
  0x45   :  { %384 = vmatpush.bf16.msra.mxu3 %v2541_v22  ;;  %503 = vmatpush.bf16.msra.mxu1 %v1913_v39  ;;  %v1982_v22 = vld [vmem:[#allocation10 + $0x78] sm:$0xf0]  ;;  %v1964_v39 = vld [vmem:[#allocation10 + $0x50] sm:$0xf] }
  0x46   :  { %494 = vmatpush.bf16.msra.mxu0 %v1877_v62  ;;  %v2610_v42 = vld [vmem:[#allocation12 + $0x6c] sm:$0xf0] }
  0x49   :  { %385 = vmatpush.bf16.msra.mxu3 %v2540_v27  ;;  %504 = vmatpush.bf16.msra.mxu1 %v1905_v45  ;;  %v1972_v27 = vld [vmem:[#allocation10 + $0x60] sm:$0xf]  ;;  %v1965_v45 = vor.u32 %v2575_v40, %v1964_v39 }
  0x4a   :  { %495 = vmatpush.bf16.msra.mxu0 %v1869_v4  ;;  %v1973_v32 = vor.u32 %v2577_v29, %v1972_v27  ;;  %v2570_v4 = vld [vmem:[#allocation10 + $0x34] sm:$0xf]  ;;  %v2583_v27 = vld [vmem:[#allocation10 + $0x94] sm:$0xf0]  ;;  %v1934_v29 = vld [vmem:[#allocation10 + $0x18] sm:$0xf0] }
  0x4b   :  { %v1924_v40 = vld [vmem:[#allocation10] sm:$0xf] }
  0x4c   :  { %712 = vmatpush.bf16.msrb.mxu2 %v1973_v32  ;;  %v1998_v32 = vld [vmem:[#allocation10 + $0x98] sm:$0xf0] }
  0x4d   :  { %505 = vmatpush.bf16.msra.mxu1 %v1897_v51  ;;  %v1956_v51 = vld [vmem:[#allocation10 + $0x40] sm:$0xf] }
  0x4e   :  { %v1957_v60 = vor.u32 %v2573_v52, %v1956_v51  ;;  %v2292_v52 = vld [vmem:[#allocation12 + $0x1e0] sm:$0xf] }
  0x4f   :  { %v2293_v55 = vor.u32 %v2658_v53, %v2292_v52  ;;  %v2084_v52 = vld [vmem:[#allocation12 + $0x40] sm:$0xf] }
  0x50   :  { %713 = vmatpush.bf16.msrb.mxu2 %v1965_v45  ;;  %v2564_v45 = vld [vmem:[#allocation10 + $0x4] sm:$0xf] }
  0x51   :  { %506 = vmatpush.bf16.msra.mxu1 %v1889_v57  ;;  %v1958_v57 = vld [vmem:[#allocation10 + $0x48] sm:$0xf0]  ;;  %v1929_v48 = vor.u32 %v2564_v45, %v1926_v46  ;;  %v2212_v46 = vld [vmem:[#allocation12 + $0x140] sm:$0xf] }
  0x52   :  { %v1961_v62 = vor.u32 %v2572_v56, %v1958_v57  ;;  %v2294_v56 = vld [vmem:[#allocation12 + $0x1f0] sm:$0xf0]  ;;  %v2276_v57 = vld [vmem:[#allocation12 + $0x1c0] sm:$0xf] }
  0x54   :  { %714 = vmatpush.bf16.msrb.mxu2 %v1957_v60  ;;  %v2652_v60 = vld [vmem:[#allocation12 + $0x1c4] sm:$0xf] }
  0x55   :  { %507 = vmatpush.bf16.msra.mxu1 %v1881_v63  ;;  %v1948_v63 = vld [vmem:[#allocation10 + $0x30] sm:$0xf] }
  0x59   :  { %508 = vmatpush.bf16.msra.mxu1 %v1873_v6  ;;  %v2586_v6 = vld [vmem:[#allocation10 + $0xb4] sm:$0xf] }
  0xad   :  { %v207_v11 = vpop.f32.mrf.mxu1 }
  0xae   :  { %v211_v12 = vmax.f32 %v207_v11, 0.0  ;;  %v2549_v11 = vld [vmem:[#allocation9 + $0x4] sm:$0xf0] }
  0xb0   :  { %v212_v13 = vpack.c.bf16 %v211_v12, %v211_v12  ;;  %v2548_v12 = vld [vmem:[#allocation9 + $0x4] sm:$0xf] }
  0xb2   :  { %1808 = vmatmul.msk.bf16.vlgmr.msrb.gmra.mxu1 %vm245_vm1, %v212_v13  ;;  %v1861_v13 = vor.u32 %v2549_v11, %v1860_v10  ;;  %v1940_v11 = vld [vmem:[#allocation10 + $0x20] sm:$0xf] }
  0xb4   :  { %496 = vmatpush.bf16.msra.mxu0 %v1861_v13  ;;  %v2004_v13 = vld [vmem:[#allocation10 + $0xa0] sm:$0xf] }
  0xb5   :  { %v209_v14 = vpop.f32.mrf.mxu1 }
  0xb6   :  { %v1862_v14 = vld [vmem:[#allocation9 + $0x8] sm:$0xf0] }
  0xb7   :  { %v1865_v15 = vor.u32 %v2548_v12, %v1862_v14  ;;  %v2569_v12 = vld [vmem:[#allocation10 + $0x24] sm:$0xf0] }
  0xb9   :  { %509 = vmatpush.bf16.msra.mxu1 %v1865_v15  ;;  %v2585_v15 = vld [vmem:[#allocation10 + $0xa4] sm:$0xf0] }
 0x12f   :  { %v258_v23 = vpop.f32.mrf.mxu1 }
 0x130   :  { %v262_v24 = vmax.f32 %v258_v23, 0.0  ;;  %v2045_v23 = vor.u32 %v2595_v20, %v2044_v18  ;;  %v2584_v18 = vld [vmem:[#allocation10 + $0xa4] sm:$0xf]  ;;  %v1941_v20 = vor.u32 %v2569_v12, %v1940_v11  ;;  %v2622_v11 = vld [vmem:[#allocation12 + $0xcc] sm:$0xf0] }
 0x132   :  { %v263_v25 = vpack.c.bf16 %v262_v24, %v262_v24  ;;  %v1985_v24 = vor.u32 %v2578_v21, %v1982_v22  ;;  %724 = vmatpush.bf16.msrb.mxu3 %v2045_v23  ;;  %v2005_v21 = vor.u32 %v2585_v15, %v2004_v13  ;;  %v1945_v22 = vor.u32 %v2568_v16, %v1942_v17  ;;  %v1932_v23 = vld [vmem:[#allocation10 + $0x10] sm:$0xf]  ;;  %v2620_v13 = vld [vmem:[#allocation12 + $0xc4] sm:$0xf]  ;;  %v2244_v17 = vld [vmem:[#allocation12 + $0x180] sm:$0xf] }
 0x134   :  { %1825 = vmatmul.msk.bf16.vlgmr.msra.gmra.mxu2 %vm245_vm1, %v263_v25  ;;  %v2594_v25 = vld [vmem:[#allocation10 + $0xf4] sm:$0xf]  ;;  %737 = vmatpush.bf16.msrb.mxu0 %v1985_v24  ;;  %v2567_v24 = vld [vmem:[#allocation10 + $0x14] sm:$0xf0] }
 0x135   :  { %v1933_v30 = vor.u32 %v2567_v24, %v1932_v23  ;;  %v2644_v23 = vld [vmem:[#allocation12 + $0x184] sm:$0xf]  ;;  %v2246_v24 = vld [vmem:[#allocation12 + $0x190] sm:$0xf0] }
 0x136   :  { %725 = vmatpush.bf16.msrb.mxu3 %v2037_v33 }
 0x137   :  { %v260_v26 = vpop.f32.mrf.mxu1 }
 0x138   :  { %v2046_v26 = vld [vmem:[#allocation10 + $0xf8] sm:$0xf0]  ;;  %738 = vmatpush.bf16.msrb.mxu0 %v1977_v37  ;;  %v2001_v37 = vor.u32 %v2582_v31, %v1998_v32  ;;  %v2612_v31 = vld [vmem:[#allocation12 + $0x84] sm:$0xf]  ;;  %v2118_v32 = vld [vmem:[#allocation12 + $0x90] sm:$0xf0] }
 0x139   :  { %v2049_v28 = vor.u32 %v2594_v25, %v2046_v26  ;;  %v1996_v25 = vld [vmem:[#allocation10 + $0x90] sm:$0xf]  ;;  %v2009_v26 = vor.u32 %v2584_v18, %v2006_v19 }
 0x13a   :  { %726 = vmatpush.bf16.msrb.mxu3 %v2029_v49  ;;  %v1997_v34 = vor.u32 %v2583_v27, %v1996_v25  ;;  %v2580_v49 = vld [vmem:[#allocation10 + $0x84] sm:$0xf]  ;;  %v2646_v18 = vld [vmem:[#allocation12 + $0x18c] sm:$0xf0]  ;;  %v2134_v25 = vld [vmem:[#allocation12 + $0xb0] sm:$0xf0] }
 0x13b   :  { %750 = vmatpush.bf16.msrb.mxu1 %v2049_v28  ;;  %v2566_v28 = vld [vmem:[#allocation10 + $0x14] sm:$0xf] }
 0x13c   :  { %739 = vmatpush.bf16.msrb.mxu0 %v1969_v50  ;;  %v1937_v35 = vor.u32 %v2566_v28, %v1934_v29  ;;  %v1990_v50 = vld [vmem:[#allocation10 + $0x88] sm:$0xf0]  ;;  %v2116_v28 = vld [vmem:[#allocation12 + $0x80] sm:$0xf]  ;;  %v2245_v29 = vor.u32 %v2646_v18, %v2244_v17  ;;  %v2070_v17 = vld [vmem:[#allocation12 + $0x30] sm:$0xf0] }
 0x13d   :  { %v1993_v51 = vor.u32 %v2580_v49, %v1990_v50  ;;  %v2214_v49 = vld [vmem:[#allocation12 + $0x150] sm:$0xf0] }
 0x13e   :  { %727 = vmatpush.bf16.msrb.mxu3 %v2021_v61  ;;  %v2278_v61 = vld [vmem:[#allocation12 + $0x1d0] sm:$0xf0] }
 0x13f   :  { %751 = vmatpush.bf16.msrb.mxu1 %v2041_v41  ;;  %v2565_v41 = vld [vmem:[#allocation10 + $0x4] sm:$0xf0] }
 0x140   :  { %740 = vmatpush.bf16.msrb.mxu0 %v1961_v62  ;;  %v1925_v43 = vor.u32 %v2565_v41, %v1924_v40  ;;  %v2164_v62 = vld [vmem:[#allocation12 + $0xe0] sm:$0xf] }
 0x141   :  { %v2100_v40 = vld [vmem:[#allocation12 + $0x60] sm:$0xf] }
 0x142   :  { %v2101_v50 = vor.u32 %v2610_v42, %v2100_v40 }
 0x143   :  { %752 = vmatpush.bf16.msrb.mxu1 %v2033_v54  ;;  %v2656_v54 = vld [vmem:[#allocation12 + $0x1e4] sm:$0xf] }
 0x144   :  { %v2297_v59 = vor.u32 %v2656_v54, %v2294_v56  ;;  %v2606_v54 = vld [vmem:[#allocation12 + $0x4c] sm:$0xf0]  ;;  %v2086_v56 = vld [vmem:[#allocation12 + $0x50] sm:$0xf0] }
 0x147   :  { %753 = vmatpush.bf16.msrb.mxu1 %v2025_v2  ;;  %v2166_v2 = vld [vmem:[#allocation12 + $0xf0] sm:$0xf0] }
 0x1b7   :  { %v308_v5 = vpop.f32.mrf.mxu2 }
 0x1b8   :  { %v312_v7 = vmax.f32 %v308_v5, 0.0  ;;  %v1950_v5 = vld [vmem:[#allocation10 + $0x38] sm:$0xf0] }
 0x1b9   :  { %v1953_v10 = vor.u32 %v2570_v4, %v1950_v5 }
 0x1ba   :  { %v313_v8 = vpack.c.bf16 %v312_v7, %v312_v7  ;;  %v2014_v7 = vld [vmem:[#allocation10 + $0xb8] sm:$0xf0] }
 0x1bb   :  { %v2017_v14 = vor.u32 %v2586_v6, %v2014_v7  ;;  %741 = vmatpush.bf16.msrb.mxu0 %v1953_v10  ;;  %v2260_v6 = vld [vmem:[#allocation12 + $0x1a0] sm:$0xf]  ;;  %v2650_v7 = vld [vmem:[#allocation12 + $0x1ac] sm:$0xf0] }
 0x1bc   :  { %386 = vmatmul.bf16.vlgmr.msra.gmra.mxu3 %v313_v8  ;;  %v1949_v8 = vor.u32 %v2571_v0, %v1948_v63  ;;  %v2277_v63 = vor.u32 %v2654_v58, %v2276_v57  ;;  %v2626_v0 = vld [vmem:[#allocation12 + $0xec] sm:$0xf0]  ;;  %v2148_v10 = vld [vmem:[#allocation12 + $0xc0] sm:$0xf]  ;;  %v2261_v15 = vor.u32 %v2650_v7, %v2260_v6 }
 0x1bd   :  { %754 = vmatpush.bf16.msrb.mxu1 %v2017_v14  ;;  %v2165_v4 = vor.u32 %v2626_v0, %v2164_v62  ;;  %v2149_v12 = vor.u32 %v2622_v11, %v2148_v10  ;;  %v2150_v14 = vld [vmem:[#allocation12 + $0xd0] sm:$0xf0]  ;;  %v2196_v58 = vld [vmem:[#allocation12 + $0x120] sm:$0xf]  ;;  %v2085_v62 = vor.u32 %v2606_v54, %v2084_v52  ;;  %v2602_v10 = vld [vmem:[#allocation12 + $0x2c] sm:$0xf0] }
 0x1be   :  { %715 = vmatpush.bf16.msrb.mxu2 %v1949_v8  ;;  %v2648_v8 = vld [vmem:[#allocation12 + $0x1a4] sm:$0xf]  ;;  %v2153_v16 = vor.u32 %v2620_v13, %v2150_v14  ;;  %v2180_v0 = vld [vmem:[#allocation12 + $0x100] sm:$0xf]  ;;  %v2659_v13 = vld [vmem:[#allocation12 + $0x1f4] sm:$0xf0] }
 0x1bf   :  { %v310_v9 = vpop.f32.mrf.mxu2  ;;  %742 = vmatpush.bf16.msrb.mxu0 %v1945_v22  ;;  %v2616_v22 = vld [vmem:[#allocation12 + $0xa4] sm:$0xf]  ;;  %v2657_v14 = vld [vmem:[#allocation12 + $0x1ec] sm:$0xf]  ;;  %v2156_v52 = vld [vmem:[#allocation12 + $0xc8] sm:$0xf] }
 0x1c0   :  { %v2013_v9 = vor.u32 %v2587_v3, %v2012_v1  ;;  %v2624_v1 = vld [vmem:[#allocation12 + $0xe4] sm:$0xf]  ;;  %v2281_v3 = vor.u32 %v2652_v60, %v2278_v61  ;;  %v2137_v27 = vor.u32 %v2616_v22, %v2134_v25  ;;  %v2198_v61 = vld [vmem:[#allocation12 + $0x130] sm:$0xf0]  ;;  %v2284_v22 = vld [vmem:[#allocation12 + $0x1c8] sm:$0xf] }
 0x1c1   :  { %755 = vmatpush.bf16.msrb.mxu1 %v2009_v26  ;;  %v2169_v5 = vor.u32 %v2624_v1, %v2166_v2  ;;  %v2632_v60 = vld [vmem:[#allocation12 + $0x124] sm:$0xf]  ;;  %v2630_v2 = vld [vmem:[#allocation12 + $0x10c] sm:$0xf0]  ;;  %v2655_v25 = vld [vmem:[#allocation12 + $0x1d4] sm:$0xf0] }
 0x1c2   :  { %728 = vmatpush.bf16.msrb.mxu3 %v2013_v9  ;;  %716 = vmatpush.bf16.msrb.mxu2 %v1941_v20  ;;  %v2262_v9 = vld [vmem:[#allocation12 + $0x1b0] sm:$0xf0]  ;;  %v2132_v20 = vld [vmem:[#allocation12 + $0xa0] sm:$0xf]  ;;  %v2201_v7 = vor.u32 %v2632_v60, %v2198_v61  ;;  %v2621_v54 = vld [vmem:[#allocation12 + $0xcc] sm:$0xf] }
 0x1c3   :  { %743 = vmatpush.bf16.msrb.mxu0 %v1937_v35  ;;  %v2265_v19 = vor.u32 %v2648_v8, %v2262_v9  ;;  %v2642_v35 = vld [vmem:[#allocation12 + $0x16c] sm:$0xf0]  ;;  %v2300_v8 = vld [vmem:[#allocation12 + $0x1e8] sm:$0xf]  ;;  %v2068_v9 = vld [vmem:[#allocation12 + $0x20] sm:$0xf] }
 0x1c4   :  { %v2645_v60 = vld [vmem:[#allocation12 + $0x18c] sm:$0xf] }
 0x1c5   :  { %756 = vmatpush.bf16.msrb.mxu1 %v2001_v37  ;;  %v2230_v37 = vld [vmem:[#allocation12 + $0x170] sm:$0xf0] }
 0x1c6   :  { %729 = vmatpush.bf16.msrb.mxu3 %v2005_v21  ;;  %717 = vmatpush.bf16.msrb.mxu2 %v1933_v30  ;;  %v2618_v21 = vld [vmem:[#allocation12 + $0xac] sm:$0xf0] }
 0x1c7   :  { %744 = vmatpush.bf16.msrb.mxu0 %v1929_v48  ;;  %v2133_v26 = vor.u32 %v2618_v21, %v2132_v20  ;;  %v2614_v30 = vld [vmem:[#allocation12 + $0x8c] sm:$0xf0]  ;;  %v2636_v48 = vld [vmem:[#allocation12 + $0x144] sm:$0xf]  ;;  %v2181_v20 = vor.u32 %v2630_v2, %v2180_v0  ;;  %v2069_v21 = vor.u32 %v2602_v10, %v2068_v9  ;;  %v2140_v0 = vld [vmem:[#allocation12 + $0xa8] sm:$0xf] }
 0x1c8   :  { %v2217_v57 = vor.u32 %v2636_v48, %v2214_v49  ;;  %v2649_v48 = vld [vmem:[#allocation12 + $0x1ac] sm:$0xf]  ;;  %v2238_v10 = vld [vmem:[#allocation12 + $0x178] sm:$0xf0] }
 0x1c9   :  { %757 = vmatpush.bf16.msrb.mxu1 %v1993_v51  ;;  %v2617_v2 = vld [vmem:[#allocation12 + $0xac] sm:$0xf] }
 0x1ca   :  { %730 = vmatpush.bf16.msrb.mxu3 %v1997_v34  ;;  %718 = vmatpush.bf16.msrb.mxu2 %v1925_v43  ;;  %v2228_v34 = vld [vmem:[#allocation12 + $0x160] sm:$0xf]  ;;  %v2608_v43 = vld [vmem:[#allocation12 + $0x64] sm:$0xf] }
 0x1cb   :  { %v2229_v41 = vor.u32 %v2642_v35, %v2228_v34  ;;  %v2105_v51 = vor.u32 %v2608_v43, %v2102_v44  ;;  %v2596_v34 = vld [vmem:[#allocation12 + $0x4] sm:$0xf]  ;;  %v2054_v35 = vld [vmem:[#allocation12 + $0x10] sm:$0xf0] }
 0x1cc   :  { %v2057_v44 = vor.u32 %v2596_v34, %v2054_v35  ;;  %v2206_v34 = vld [vmem:[#allocation12 + $0x138] sm:$0xf0]  ;;  %v2092_v35 = vld [vmem:[#allocation12 + $0x48] sm:$0xf] }
 0x1ce   :  { %731 = vmatpush.bf16.msrb.mxu3 %v1989_v47  ;;  %1151 = vmatpush.bf16.msra.mxu2 %v2165_v4  ;;  %v2638_v47 = vld [vmem:[#allocation12 + $0x14c] sm:$0xf0]  ;;  %v2182_v4 = vld [vmem:[#allocation12 + $0x110] sm:$0xf0] }
 0x1cf   :  { %v2213_v53 = vor.u32 %v2638_v47, %v2212_v46  ;;  %v2268_v46 = vld [vmem:[#allocation12 + $0x1a8] sm:$0xf]  ;;  %v2651_v47 = vld [vmem:[#allocation12 + $0x1b4] sm:$0xf0] }
 0x1d0   :  { %v2269_v49 = vor.u32 %v2651_v47, %v2268_v46 }
 0x1d2   :  { %1164 = vmatpush.bf16.msra.mxu3 %v2293_v55  ;;  %1152 = vmatpush.bf16.msra.mxu2 %v2149_v12  ;;  %v2604_v55 = vld [vmem:[#allocation12 + $0x44] sm:$0xf] }
 0x1d6   :  { %1165 = vmatpush.bf16.msra.mxu3 %v2277_v63  ;;  %1153 = vmatpush.bf16.msra.mxu2 %v2133_v26  ;;  %v2089_v63 = vor.u32 %v2604_v55, %v2086_v56  ;;  %v2052_v26 = vld [vmem:[#allocation12] sm:$0xf]  ;;  %v2158_v56 = vld [vmem:[#allocation12 + $0xd8] sm:$0xf0] }
 0x1da   :  { %1166 = vmatpush.bf16.msra.mxu3 %v2261_v15  ;;  %v2302_v15 = vld [vmem:[#allocation12 + $0x1f8] sm:$0xf0] }
 0x1de   :  { %1167 = vmatpush.bf16.msra.mxu3 %v2245_v29 }
 0x1e2   :  { %1168 = vmatpush.bf16.msra.mxu3 %v2229_v41  ;;  %v2285_v41 = vor.u32 %v2655_v25, %v2284_v22  ;;  %v2222_v22 = vld [vmem:[#allocation12 + $0x158] sm:$0xf0]  ;;  %v2611_v25 = vld [vmem:[#allocation12 + $0x74] sm:$0xf0] }
 0x1e6   :  { %1169 = vmatpush.bf16.msra.mxu3 %v2213_v53  ;;  %v2623_v53 = vld [vmem:[#allocation12 + $0xd4] sm:$0xf0] }
 0x1e7   :  { %v2157_v55 = vor.u32 %v2623_v53, %v2156_v52  ;;  %v2078_v52 = vld [vmem:[#allocation12 + $0x38] sm:$0xf0] }
 0x23f   :  { %v387_v33 = vpop.f32.mrf.mxu3 }
 0x240   :  { %v391_v36 = vmax.f32 %v387_v33, 0.0  ;;  %v2249_v33 = vor.u32 %v2644_v23, %v2246_v24  ;;  %v2301_v24 = vor.u32 %v2659_v13, %v2300_v8  ;;  %v2641_v8 = vld [vmem:[#allocation12 + $0x16c] sm:$0xf]  ;;  %v2615_v13 = vld [vmem:[#allocation12 + $0x94] sm:$0xf0] }
 0x242   :  { %v392_v38 = vpack.c.bf16 %v391_v36, %v391_v36  ;;  %v2640_v36 = vld [vmem:[#allocation12 + $0x164] sm:$0xf] }
 0x243   :  { %v2233_v45 = vor.u32 %v2640_v36, %v2230_v37  ;;  %v2625_v37 = vld [vmem:[#allocation12 + $0xec] sm:$0xf] }
 0x244   :  { %497 = vmatmul.bf16.vlgmr.msra.gmra.mxu0 %v392_v38  ;;  %510 = vmatmul.bf16.vlgmr.msra.gmra.mxu1 %v392_v38  ;;  %v2117_v38 = vor.u32 %v2614_v30, %v2116_v28  ;;  %v2305_v28 = vor.u32 %v2657_v14, %v2302_v15  ;;  %v2653_v30 = vld [vmem:[#allocation12 + $0x1cc] sm:$0xf] }
 0x245   :  { %1190 = vmatpush.bf16.msra.mxu1 %v2297_v59  ;;  %1177 = vmatpush.bf16.msra.mxu0 %v2169_v5  ;;  %v2634_v59 = vld [vmem:[#allocation12 + $0x12c] sm:$0xf0]  ;;  %v2613_v14 = vld [vmem:[#allocation12 + $0x8c] sm:$0xf] }
 0x246   :  { %1154 = vmatpush.bf16.msra.mxu2 %v2117_v38  ;;  %v2197_v1 = vor.u32 %v2634_v59, %v2196_v58  ;;  %v2174_v38 = vld [vmem:[#allocation12 + $0xf8] sm:$0xf0]  ;;  %v2252_v58 = vld [vmem:[#allocation12 + $0x188] sm:$0xf]  ;;  %v2647_v59 = vld [vmem:[#allocation12 + $0x194] sm:$0xf0] }
 0x247   :  { %v389_v39 = vpop.f32.mrf.mxu3  ;;  %v2253_v61 = vor.u32 %v2647_v59, %v2252_v58  ;;  %v2062_v58 = vld [vmem:[#allocation12 + $0x18] sm:$0xf0] }
 0x248   :  { %v2121_v39 = vor.u32 %v2612_v31, %v2118_v32  ;;  %1170 = vmatpush.bf16.msra.mxu3 %v2197_v1  ;;  %v2172_v31 = vld [vmem:[#allocation12 + $0xe8] sm:$0xf]  ;;  %v2627_v32 = vld [vmem:[#allocation12 + $0xf4] sm:$0xf0] }
 0x249   :  { %1191 = vmatpush.bf16.msra.mxu1 %v2281_v3  ;;  %1178 = vmatpush.bf16.msra.mxu0 %v2153_v16  ;;  %v2628_v3 = vld [vmem:[#allocation12 + $0x104] sm:$0xf]  ;;  %v2173_v42 = vor.u32 %v2627_v32, %v2172_v31  ;;  %v2619_v1 = vld [vmem:[#allocation12 + $0xb4] sm:$0xf0]  ;;  %v2633_v32 = vld [vmem:[#allocation12 + $0x12c] sm:$0xf] }
 0x24a   :  { %1155 = vmatpush.bf16.msra.mxu2 %v2101_v50  ;;  %v2600_v16 = vld [vmem:[#allocation12 + $0x24] sm:$0xf]  ;;  %v2185_v23 = vor.u32 %v2628_v3, %v2182_v4  ;;  %v2270_v50 = vld [vmem:[#allocation12 + $0x1b8] sm:$0xf0]  ;;  %v2141_v3 = vor.u32 %v2619_v1, %v2140_v0  ;;  %v2635_v31 = vld [vmem:[#allocation12 + $0x134] sm:$0xf0] }
 0x24b   :  { %v2073_v29 = vor.u32 %v2600_v16, %v2070_v17  ;;  %v2142_v4 = vld [vmem:[#allocation12 + $0xb8] sm:$0xf0] }
 0x24c   :  { %1171 = vmatpush.bf16.msra.mxu3 %v2181_v20  ;;  %v2126_v16 = vld [vmem:[#allocation12 + $0x98] sm:$0xf0]  ;;  %v2637_v20 = vld [vmem:[#allocation12 + $0x14c] sm:$0xf] }
 0x24d   :  { %1192 = vmatpush.bf16.msra.mxu1 %v2265_v19  ;;  %1179 = vmatpush.bf16.msra.mxu0 %v2137_v27  ;;  %v2598_v27 = vld [vmem:[#allocation12 + $0xc] sm:$0xf0]  ;;  %v2129_v17 = vor.u32 %v2613_v14, %v2126_v16  ;;  %v2675_v0 = vld [vmem:[#allocation13 + $0x78] sm:$0xff]  ;;  %v2673_v14 = vld [vmem:[#allocation13 + $0x68] sm:$0xff] }
 0x24e   :  { %1156 = vmatpush.bf16.msra.mxu2 %v2085_v62  ;;  %v2053_v36 = vor.u32 %v2598_v27, %v2052_v26  ;;  %v2254_v62 = vld [vmem:[#allocation12 + $0x198] sm:$0xf0]  ;;  %v2609_v26 = vld [vmem:[#allocation12 + $0x6c] sm:$0xf]  ;;  %v2672_v16 = vld [vmem:[#allocation13 + $0x60] sm:$0xff] }
 0x24f   :  { %v2691_v1 = vld [vmem:[#allocation13 + $0xf8] sm:$0xff] }
 0x251   :  { %1193 = vmatpush.bf16.msra.mxu1 %v2249_v33  ;;  %1180 = vmatpush.bf16.msra.mxu0 %v2121_v39  ;;  %v2286_v33 = vld [vmem:[#allocation12 + $0x1d8] sm:$0xf0] }
 0x252   :  { %1157 = vmatpush.bf16.msra.mxu2 %v2069_v21  ;;  %v2289_v43 = vor.u32 %v2653_v30, %v2286_v33  ;;  %v2204_v30 = vld [vmem:[#allocation12 + $0x128] sm:$0xf] }
 0x253   :  { %v2205_v33 = vor.u32 %v2635_v31, %v2204_v30  ;;  %v2661_v30 = vld [vmem:[#allocation13 + $0x8] sm:$0xff] }
 0x254   :  { %v2681_v31 = vld [vmem:[#allocation13 + $0xa8] sm:$0xff] }
 0x255   :  { %1194 = vmatpush.bf16.msra.mxu1 %v2233_v45  ;;  %1181 = vmatpush.bf16.msra.mxu0 %v2105_v51  ;;  %v2177_v45 = vor.u32 %v2625_v37, %v2174_v38  ;;  %v2273_v51 = vor.u32 %v2649_v48, %v2270_v50  ;;  %v2209_v37 = vor.u32 %v2633_v32, %v2206_v34  ;;  %v2076_v48 = vld [vmem:[#allocation12 + $0x28] sm:$0xf]  ;;  %v2601_v50 = vld [vmem:[#allocation12 + $0x2c] sm:$0xf]  ;;  %v2687_v32 = vld [vmem:[#allocation13 + $0xd8] sm:$0xff] }
 0x256   :  { %1158 = vmatpush.bf16.msra.mxu2 %v2053_v36  ;;  %v2607_v36 = vld [vmem:[#allocation12 + $0x54] sm:$0xf0]  ;;  %v2081_v53 = vor.u32 %v2601_v50, %v2078_v52  ;;  %v2680_v34 = vld [vmem:[#allocation13 + $0xa0] sm:$0xff] }
 0x257   :  { %v2093_v38 = vor.u32 %v2607_v36, %v2092_v35  ;;  %v2686_v35 = vld [vmem:[#allocation13 + $0xd0] sm:$0xff]  ;;  %v2679_v36 = vld [vmem:[#allocation13 + $0x98] sm:$0xff] }
 0x259   :  { %1195 = vmatpush.bf16.msra.mxu1 %v2217_v57  ;;  %1182 = vmatpush.bf16.msra.mxu0 %v2089_v63  ;;  %v2161_v57 = vor.u32 %v2621_v54, %v2158_v56  ;;  %v2257_v63 = vor.u32 %v2645_v60, %v2254_v62  ;;  %v2060_v54 = vld [vmem:[#allocation12 + $0x8] sm:$0xf]  ;;  %v2597_v56 = vld [vmem:[#allocation12 + $0xc] sm:$0xf] }
 0x25a   :  { %v2065_v59 = vor.u32 %v2597_v56, %v2062_v58 }
 0x25d   :  { %1196 = vmatpush.bf16.msra.mxu1 %v2201_v7  ;;  %1183 = vmatpush.bf16.msra.mxu0 %v2073_v29  ;;  %v2643_v7 = vld [vmem:[#allocation12 + $0x174] sm:$0xf0] }
 0x261   :  { %1197 = vmatpush.bf16.msra.mxu1 %v2185_v23  ;;  %1184 = vmatpush.bf16.msra.mxu0 %v2057_v44  ;;  %v2225_v23 = vor.u32 %v2637_v20, %v2222_v22  ;;  %v2629_v44 = vld [vmem:[#allocation12 + $0x10c] sm:$0xf]  ;;  %v2670_v20 = vld [vmem:[#allocation13 + $0x50] sm:$0xff]  ;;  %v2663_v22 = vld [vmem:[#allocation13 + $0x18] sm:$0xff] }
 0x2c1   :  { %v498_v5 = vpop.f32.mrf.mxu0  ;;  %v511_v6 = vpop.f32.mrf.mxu1 }
 0x2c2   :  { %v515_v11 = vmax.f32 %v498_v5, 0.0  ;;  %v516_v12 = vmax.f32 %v511_v6, 0.0  ;;  %v2145_v5 = vor.u32 %v2617_v2, %v2142_v4  ;;  %v2236_v6 = vld [vmem:[#allocation12 + $0x168] sm:$0xf] }
 0x2c3   :  { %v2237_v9 = vor.u32 %v2643_v7, %v2236_v6 }
 0x2c4   :  { %v517_v18 = vpack.c.bf16 %v515_v11, %v515_v11  ;;  %v518_v19 = vpack.c.bf16 %v516_v12, %v516_v12  ;;  %v2241_v11 = vor.u32 %v2641_v8, %v2238_v10  ;;  %v2124_v12 = vld [vmem:[#allocation12 + $0x88] sm:$0xf]  ;;  %v2667_v10 = vld [vmem:[#allocation13 + $0x38] sm:$0xff] }
 0x2c5   :  { %v2125_v15 = vor.u32 %v2615_v13, %v2124_v12 }
 0x2c6   :  { %719 = vmatmul.bf16.vlgmr.msrb.gmra.mxu2 %v517_v18  ;;  %732 = vmatmul.bf16.vlgmr.msrb.gmra.mxu3 %v518_v19 }
 0x2c7   :  { %745 = vmatmul.bf16.vlgmr.msrb.gmra.mxu0 %v517_v18  ;;  %758 = vmatmul.bf16.vlgmr.msrb.gmra.mxu1 %v518_v19  ;;  %v2220_v18 = vld [vmem:[#allocation12 + $0x148] sm:$0xf]  ;;  %v2639_v19 = vld [vmem:[#allocation12 + $0x154] sm:$0xf0] }
 0x2c8   :  { %1216 = vmatpush.bf16.msrb.mxu3 %v2301_v24  ;;  %1242 = vmatpush.bf16.msrb.mxu1 %v2305_v28  ;;  %v2221_v21 = vor.u32 %v2639_v19, %v2220_v18  ;;  %v2108_v24 = vld [vmem:[#allocation12 + $0x68] sm:$0xf]  ;;  %v2110_v28 = vld [vmem:[#allocation12 + $0x78] sm:$0xf0]  ;;  %v2664_v19 = vld [vmem:[#allocation13 + $0x20] sm:$0xff] }
 0x2c9   :  { %v500_v39 = vpop.f32.mrf.mxu0  ;;  %v513_v40 = vpop.f32.mrf.mxu1  ;;  %1203 = vmatpush.bf16.msrb.mxu2 %v2173_v42  ;;  %1229 = vmatpush.bf16.msrb.mxu0 %v2177_v45  ;;  %v2109_v27 = vor.u32 %v2611_v25, %v2108_v24  ;;  %v2113_v29 = vor.u32 %v2609_v26, %v2110_v28  ;;  %v2190_v45 = vld [vmem:[#allocation12 + $0x118] sm:$0xf0]  ;;  %v2669_v24 = vld [vmem:[#allocation13 + $0x48] sm:$0xff]  ;;  %v2662_v26 = vld [vmem:[#allocation13 + $0x10] sm:$0xff] }
 0x2ca   :  { %v2605_v39 = vld [vmem:[#allocation12 + $0x4c] sm:$0xf]  ;;  %v2094_v40 = vld [vmem:[#allocation12 + $0x58] sm:$0xf0]  ;;  %v2193_v47 = vor.u32 %v2629_v44, %v2190_v45  ;;  %v2668_v28 = vld [vmem:[#allocation13 + $0x40] sm:$0xff] }
 0x2cb   :  { %v2097_v42 = vor.u32 %v2605_v39, %v2094_v40  ;;  %v2671_v18 = vld [vmem:[#allocation13 + $0x58] sm:$0xff]  ;;  %v2689_v25 = vld [vmem:[#allocation13 + $0xe8] sm:$0xff]  ;;  %v2684_v39 = vld [vmem:[#allocation13 + $0xc0] sm:$0xff] }
 0x2cc   :  { %1217 = vmatpush.bf16.msrb.mxu3 %v2285_v41  ;;  %1243 = vmatpush.bf16.msrb.mxu1 %v2289_v43  ;;  %v2188_v41 = vld [vmem:[#allocation12 + $0x108] sm:$0xf]  ;;  %v2631_v43 = vld [vmem:[#allocation12 + $0x114] sm:$0xf0]  ;;  %v2714_v44 = vld [vmem:[#allocation15 + $0xb0] sm:$0xf0] }
 0x2cd   :  { %1204 = vmatpush.bf16.msrb.mxu2 %v2157_v55  ;;  %1230 = vmatpush.bf16.msrb.mxu0 %v2161_v57  ;;  %v2189_v46 = vor.u32 %v2631_v43, %v2188_v41  ;;  %v2599_v55 = vld [vmem:[#allocation12 + $0x14] sm:$0xf0]  ;;  %v2677_v40 = vld [vmem:[#allocation13 + $0x88] sm:$0xff]  ;;  %v2676_v41 = vld [vmem:[#allocation13 + $0x80] sm:$0xff] }
 0x2ce   :  { %v2061_v57 = vor.u32 %v2599_v55, %v2060_v54  ;;  %v2520_v43 = vld [vmem:[#allocation15 + $0xa8] sm:$0xf]  ;;  %v2713_v45 = vld [vmem:[#allocation15 + $0xac] sm:$0xf]  ;;  %v2711_v54 = vld [vmem:[#allocation15 + $0x98] sm:$0xf0] }
 0x2cf   :  { %v2710_v55 = vld [vmem:[#allocation15 + $0x94] sm:$0xf] }
 0x2d0   :  { %1218 = vmatpush.bf16.msrb.mxu3 %v2269_v49  ;;  %1244 = vmatpush.bf16.msrb.mxu1 %v2273_v51  ;;  %v2603_v49 = vld [vmem:[#allocation12 + $0x34] sm:$0xf0] }
 0x2d1   :  { %1205 = vmatpush.bf16.msrb.mxu2 %v2141_v3  ;;  %1231 = vmatpush.bf16.msrb.mxu0 %v2145_v5  ;;  %v2077_v51 = vor.u32 %v2603_v49, %v2076_v48  ;;  %v2528_v48 = vld [vmem:[#allocation15 + $0xb0] sm:$0xf]  ;;  %v2715_v49 = vld [vmem:[#allocation15 + $0xb8] sm:$0xf0] }
 0x2d2   :  { %v2529_v52 = vor.u32 %v2715_v49, %v2528_v48  ;;  %v2703_v48 = vld [vmem:[#allocation15 + $0x58] sm:$0xf0] }
 0x2d4   :  { %1219 = vmatpush.bf16.msrb.mxu3 %v2253_v61  ;;  %1245 = vmatpush.bf16.msrb.mxu1 %v2257_v63 }
 0x2d5   :  { %1206 = vmatpush.bf16.msrb.mxu2 %v2125_v15  ;;  %1232 = vmatpush.bf16.msrb.mxu0 %v2129_v17  ;;  %v2666_v15 = vld [vmem:[#allocation13 + $0x30] sm:$0xff]  ;;  %v2665_v17 = vld [vmem:[#allocation13 + $0x28] sm:$0xff] }
 0x2d8   :  { %1220 = vmatpush.bf16.msrb.mxu3 %v2237_v9  ;;  %1246 = vmatpush.bf16.msrb.mxu1 %v2241_v11  ;;  %v2674_v9 = vld [vmem:[#allocation13 + $0x70] sm:$0xff] }
 0x2d9   :  { %1207 = vmatpush.bf16.msrb.mxu2 %v2109_v27  ;;  %1233 = vmatpush.bf16.msrb.mxu0 %v2113_v29  ;;  %v2682_v27 = vld [vmem:[#allocation13 + $0xb0] sm:$0xff]  ;;  %v2688_v29 = vld [vmem:[#allocation13 + $0xe0] sm:$0xff] }
 0x2dc   :  { %1221 = vmatpush.bf16.msrb.mxu3 %v2221_v21  ;;  %1247 = vmatpush.bf16.msrb.mxu1 %v2225_v23  ;;  %v2690_v21 = vld [vmem:[#allocation13 + $0xf0] sm:$0xff]  ;;  %v2683_v23 = vld [vmem:[#allocation13 + $0xb8] sm:$0xff] }
 0x2dd   :  { %1208 = vmatpush.bf16.msrb.mxu2 %v2093_v38  ;;  %1234 = vmatpush.bf16.msrb.mxu0 %v2097_v42  ;;  %v2678_v38 = vld [vmem:[#allocation13 + $0x90] sm:$0xff] }
 0x2e0   :  { %1222 = vmatpush.bf16.msrb.mxu3 %v2205_v33  ;;  %1248 = vmatpush.bf16.msrb.mxu1 %v2209_v37  ;;  %v2660_v33 = vld [vmem:[#allocation13] sm:$0xff]  ;;  %v2685_v37 = vld [vmem:[#allocation13 + $0xc8] sm:$0xff] }
 0x2e1   :  { %1209 = vmatpush.bf16.msrb.mxu2 %v2077_v51  ;;  %1235 = vmatpush.bf16.msrb.mxu0 %v2081_v53  ;;  %v2508_v53 = vld [vmem:[#allocation15 + $0x90] sm:$0xf] }
 0x2e2   :  { %v2509_v58 = vor.u32 %v2711_v54, %v2508_v53  ;;  %v2698_v53 = vld [vmem:[#allocation15 + $0x34] sm:$0xf] }
 0x2e4   :  { %1223 = vmatpush.bf16.msrb.mxu3 %v2189_v46  ;;  %1249 = vmatpush.bf16.msrb.mxu1 %v2193_v47  ;;  %v2521_v46 = vor.u32 %v2714_v44, %v2520_v43  ;;  %v2522_v47 = vld [vmem:[#allocation15 + $0xb4] sm:$0xf0]  ;;  %v2702_v43 = vld [vmem:[#allocation15 + $0x50] sm:$0xf0]  ;;  %v2701_v44 = vld [vmem:[#allocation15 + $0x4c] sm:$0xf] }
 0x2e5   :  { %1210 = vmatpush.bf16.msrb.mxu2 %v2061_v57  ;;  %1236 = vmatpush.bf16.msrb.mxu0 %v2065_v59  ;;  %v2525_v51 = vor.u32 %v2713_v45, %v2522_v47  ;;  %v2510_v59 = vld [vmem:[#allocation15 + $0x9c] sm:$0xf0]  ;;  %v2480_v47 = vld [vmem:[#allocation15 + $0x50] sm:$0xf] }
 0x344   :  { %v746_v60 = vpop.f32.mrf.mxu0  ;;  %v759_v61 = vpop.f32.mrf.mxu1 }
 0x345   :  { %v760_v62 = vadd.f32 %v759_v61, %v746_v60  ;;  %v2516_v60 = vld [vmem:[#allocation15 + $0x98] sm:$0xf]  ;;  %v2712_v61 = vld [vmem:[#allocation15 + $0xa0] sm:$0xf0] }
 0x347   :  { %v764_v63 = vmax.f32 %v760_v62, 0.0  ;;  %v2513_v62 = vor.u32 %v2710_v55, %v2510_v59  ;;  %v2462_v55 = vld [vmem:[#allocation15 + $0x3c] sm:$0xf0] }
 0x349   :  { %v766_v2 = vpack.c.bf16 %v764_v63, %v764_v63  ;;  %v720_v3 = vpop.f32.mrf.mxu2  ;;  %v733_v4 = vpop.f32.mrf.mxu3  ;;  %v2517_v63 = vor.u32 %v2712_v61, %v2516_v60  ;;  %v2448_v60 = vld [vmem:[#allocation15 + $0x18] sm:$0xf]  ;;  %v2696_v61 = vld [vmem:[#allocation15 + $0x20] sm:$0xf0] }
 0x34a   :  { %v734_v5 = vadd.f32 %v733_v4, %v720_v3 }
 0x34b   :  { %1172 = vmatmul.bf16.vlgmr.msra.gmra.mxu3 %v766_v2  ;;  %1198 = vmatmul.bf16.vlgmr.msra.gmra.mxu1 %v766_v2 }
 0x34c   :  { %v763_v6 = vmax.f32 %v734_v5, 0.0  ;;  %v748_v7 = vpop.f32.mrf.mxu0  ;;  %v761_v8 = vpop.f32.mrf.mxu1  ;;  %1532 = vmatpush.bf16.msra.mxu3 %v2675_v0  ;;  %1558 = vmatpush.bf16.msra.mxu1 %v2691_v1 }
 0x34e   :  { %v765_v11 = vpack.c.bf16 %v763_v6, %v763_v6 }
 0x350   :  { %1159 = vmatmul.bf16.vlgmr.msra.gmra.mxu2 %v765_v11  ;;  %1185 = vmatmul.bf16.vlgmr.msra.gmra.mxu0 %v765_v11 }
 0x351   :  { %v722_v12 = vpop.f32.mrf.mxu2  ;;  %v735_v13 = vpop.f32.mrf.mxu3  ;;  %1533 = vmatpush.bf16.msra.mxu3 %v2674_v9  ;;  %1519 = vmatpush.bf16.msra.mxu2 %v2667_v10 }
 0x352   :  { %1559 = vmatpush.bf16.msra.mxu1 %v2690_v21  ;;  %1545 = vmatpush.bf16.msra.mxu0 %v2683_v23 }
 0x355   :  { %1534 = vmatpush.bf16.msra.mxu3 %v2673_v14  ;;  %1520 = vmatpush.bf16.msra.mxu2 %v2666_v15 }
 0x356   :  { %1560 = vmatpush.bf16.msra.mxu1 %v2689_v25  ;;  %1546 = vmatpush.bf16.msra.mxu0 %v2682_v27  ;;  %v2708_v25 = vld [vmem:[#allocation15 + $0x80] sm:$0xf0] }
 0x359   :  { %1535 = vmatpush.bf16.msra.mxu3 %v2672_v16  ;;  %1521 = vmatpush.bf16.msra.mxu2 %v2665_v17 }
 0x35a   :  { %1561 = vmatpush.bf16.msra.mxu1 %v2688_v29  ;;  %1547 = vmatpush.bf16.msra.mxu0 %v2681_v31  ;;  %v2504_v29 = vld [vmem:[#allocation15 + $0x80] sm:$0xf] }
 0x35b   :  { %1224 = vmatmul.bf16.vlgmr.msrb.gmra.mxu3 %v766_v2  ;;  %1250 = vmatmul.bf16.vlgmr.msrb.gmra.mxu1 %v766_v2 }
 0x35d   :  { %1536 = vmatpush.bf16.msra.mxu3 %v2671_v18  ;;  %1522 = vmatpush.bf16.msra.mxu2 %v2664_v19 }
 0x35e   :  { %1562 = vmatpush.bf16.msra.mxu1 %v2687_v32  ;;  %1548 = vmatpush.bf16.msra.mxu0 %v2680_v34  ;;  %v2705_v34 = vld [vmem:[#allocation15 + $0x68] sm:$0xf0] }
 0x360   :  { %1211 = vmatmul.bf16.vlgmr.msrb.gmra.mxu2 %v765_v11  ;;  %1237 = vmatmul.bf16.vlgmr.msrb.gmra.mxu0 %v765_v11 }
 0x361   :  { %1537 = vmatpush.bf16.msra.mxu3 %v2670_v20  ;;  %1523 = vmatpush.bf16.msra.mxu2 %v2663_v22 }
 0x362   :  { %1563 = vmatpush.bf16.msra.mxu1 %v2686_v35  ;;  %1549 = vmatpush.bf16.msra.mxu0 %v2679_v36  ;;  %v2704_v35 = vld [vmem:[#allocation15 + $0x64] sm:$0xf] }
 0x365   :  { %1538 = vmatpush.bf16.msra.mxu3 %v2669_v24  ;;  %1524 = vmatpush.bf16.msra.mxu2 %v2662_v26  ;;  %v2496_v24 = vld [vmem:[#allocation15 + $0x78] sm:$0xf]  ;;  %v2707_v26 = vld [vmem:[#allocation15 + $0x7c] sm:$0xf] }
 0x366   :  { %1564 = vmatpush.bf16.msra.mxu1 %v2685_v37  ;;  %1550 = vmatpush.bf16.msra.mxu0 %v2678_v38  ;;  %v2497_v27 = vor.u32 %v2708_v25, %v2496_v24  ;;  %v2486_v37 = vld [vmem:[#allocation15 + $0x6c] sm:$0xf0]  ;;  %v2492_v38 = vld [vmem:[#allocation15 + $0x68] sm:$0xf] }
 0x369   :  { %1539 = vmatpush.bf16.msra.mxu3 %v2668_v28  ;;  %1525 = vmatpush.bf16.msra.mxu2 %v2661_v30  ;;  %v2498_v28 = vld [vmem:[#allocation15 + $0x84] sm:$0xf0]  ;;  %v2709_v30 = vld [vmem:[#allocation15 + $0x88] sm:$0xf0] }
 0x36a   :  { %1565 = vmatpush.bf16.msra.mxu1 %v2684_v39  ;;  %1551 = vmatpush.bf16.msra.mxu0 %v2677_v40  ;;  %v2501_v31 = vor.u32 %v2707_v26, %v2498_v28  ;;  %v2505_v32 = vor.u32 %v2709_v30, %v2504_v29  ;;  %v2706_v39 = vld [vmem:[#allocation15 + $0x70] sm:$0xf0]  ;;  %v2489_v40 = vor.u32 %v2704_v35, %v2486_v37 }
 0x36d   :  { %1526 = vmatpush.bf16.msra.mxu2 %v2660_v33  ;;  %1745 = vmatpush.bf16.msrb.mxu3 %v2525_v51  ;;  %v2484_v33 = vld [vmem:[#allocation15 + $0x60] sm:$0xf]  ;;  %v2460_v51 = vld [vmem:[#allocation15 + $0x30] sm:$0xf] }
 0x36e   :  { %1552 = vmatpush.bf16.msra.mxu0 %v2676_v41  ;;  %v2485_v36 = vor.u32 %v2705_v34, %v2484_v33  ;;  %v2493_v41 = vor.u32 %v2706_v39, %v2492_v38 }
 0x371   :  { %1732 = vmatpush.bf16.msrb.mxu2 %v2521_v46  ;;  %1746 = vmatpush.bf16.msrb.mxu3 %v2513_v62  ;;  %v2474_v46 = vld [vmem:[#allocation15 + $0x54] sm:$0xf0]  ;;  %v2695_v62 = vld [vmem:[#allocation15 + $0x1c] sm:$0xf] }
 0x372   :  { %1758 = vmatpush.bf16.msrb.mxu0 %v2529_v52  ;;  %v2477_v49 = vor.u32 %v2701_v44, %v2474_v46  ;;  %v2699_v52 = vld [vmem:[#allocation15 + $0x38] sm:$0xf0] }
 0x373   :  { %v2461_v54 = vor.u32 %v2699_v52, %v2460_v51 }
 0x375   :  { %1733 = vmatpush.bf16.msrb.mxu2 %v2509_v58  ;;  %1747 = vmatpush.bf16.msrb.mxu3 %v2501_v31  ;;  %v2465_v58 = vor.u32 %v2698_v53, %v2462_v55 }
 0x376   :  { %1759 = vmatpush.bf16.msrb.mxu0 %v2517_v63  ;;  %v2449_v63 = vor.u32 %v2696_v61, %v2448_v60 }
 0x379   :  { %1734 = vmatpush.bf16.msrb.mxu2 %v2497_v27  ;;  %1748 = vmatpush.bf16.msrb.mxu3 %v2489_v40 }
 0x37a   :  { %1760 = vmatpush.bf16.msrb.mxu0 %v2505_v32 }
 0x37d   :  { %1735 = vmatpush.bf16.msrb.mxu2 %v2485_v36  ;;  %1749 = vmatpush.bf16.msrb.mxu3 %v2477_v49 }
 0x37e   :  { %1761 = vmatpush.bf16.msrb.mxu0 %v2493_v41 }
 0x381   :  { %1750 = vmatpush.bf16.msrb.mxu3 %v2465_v58 }
 0x3c8   :  { %v1199_v42 = vpop.f32.mrf.mxu1 }
 0x3cd   :  { %v1186_v50 = vpop.f32.mrf.mxu0 }
 0x3ce   :  { %v1173_v56 = vpop.f32.mrf.mxu3  ;;  %v1200_v57 = vadd.f32 %v1199_v42, %v1186_v50  ;;  %v2472_v42 = vld [vmem:[#allocation15 + $0x48] sm:$0xf]  ;;  %v2481_v50 = vor.u32 %v2703_v48, %v2480_v47 }
 0x3cf   :  { %v2473_v45 = vor.u32 %v2702_v43, %v2472_v42 }
 0x3d0   :  { %v1256_v0 = vmax.f32 %v1200_v57, 0.0  ;;  %v1201_v1 = vpop.f32.mrf.mxu1  ;;  %1762 = vmatpush.bf16.msrb.mxu0 %v2481_v50  ;;  %v2700_v57 = vld [vmem:[#allocation15 + $0x40] sm:$0xf0] }
 0x3d1   :  { %1736 = vmatpush.bf16.msrb.mxu2 %v2473_v45  ;;  %v2456_v1 = vld [vmem:[#allocation15 + $0x20] sm:$0xf] }
 0x3d2   :  { %v1260_v2 = vpack.c.bf16 %v1256_v0, %v1256_v0  ;;  %v2450_v0 = vld [vmem:[#allocation15 + $0x24] sm:$0xf0] }
 0x3d3   :  { %v1160_v3 = vpop.f32.mrf.mxu2 }
 0x3d4   :  { %v1174_v4 = vadd.f32 %v1173_v56, %v1160_v3  ;;  %1540 = vmatmul.bf16.vlgmr.msra.gmra.mxu3 %v1260_v2  ;;  %v2468_v56 = vld [vmem:[#allocation15 + $0x38] sm:$0xf]  ;;  %v2697_v2 = vld [vmem:[#allocation15 + $0x28] sm:$0xf0]  ;;  %v2453_v3 = vor.u32 %v2695_v62, %v2450_v0 }
 0x3d5   :  { %v1188_v5 = vpop.f32.mrf.mxu0  ;;  %v2469_v59 = vor.u32 %v2700_v57, %v2468_v56  ;;  %1737 = vmatpush.bf16.msrb.mxu2 %v2461_v54 }
 0x3d6   :  { %v1255_v6 = vmax.f32 %v1174_v4, 0.0  ;;  %v1175_v7 = vpop.f32.mrf.mxu3  ;;  %v2457_v4 = vor.u32 %v2697_v2, %v2456_v1  ;;  %1751 = vmatpush.bf16.msrb.mxu3 %v2453_v3  ;;  %v2436_v5 = vld [vmem:[#allocation15] sm:$0xf] }
 0x3d7   :  { %1763 = vmatpush.bf16.msrb.mxu0 %v2469_v59  ;;  %v2692_v7 = vld [vmem:[#allocation15 + $0x4] sm:$0xf] }
 0x3d8   :  { %v1259_v8 = vpack.c.bf16 %v1255_v6, %v1255_v6  ;;  %v1251_v9 = vpop.f32.mrf.mxu1  ;;  %v2693_v6 = vld [vmem:[#allocation15 + $0x8] sm:$0xf0] }
 0x3d9   :  { %1738 = vmatpush.bf16.msrb.mxu2 %v2449_v63 }
 0x3da   :  { %1527 = vmatmul.bf16.vlgmr.msra.gmra.mxu2 %v1259_v8  ;;  %v2437_v8 = vor.u32 %v2693_v6, %v2436_v5 }
 0x3db   :  { %v1162_v10 = vpop.f32.mrf.mxu2  ;;  %1764 = vmatpush.bf16.msrb.mxu0 %v2457_v4 }
 0x3dc   :  { %v2444_v10 = vld [vmem:[#allocation15 + $0x8] sm:$0xf] }
 0x3dd   :  { %v1238_v11 = vpop.f32.mrf.mxu0  ;;  %1739 = vmatpush.bf16.msrb.mxu2 %v2437_v8 }
 0x3de   :  { %v1225_v12 = vpop.f32.mrf.mxu3  ;;  %v1252_v13 = vadd.f32 %v1251_v9, %v1238_v11  ;;  %v2438_v9 = vld [vmem:[#allocation15 + $0xc] sm:$0xf0]  ;;  %v2694_v11 = vld [vmem:[#allocation15 + $0x10] sm:$0xf0] }
 0x3e0   :  { %v1258_v14 = vmax.f32 %v1252_v13, 0.0  ;;  %v1253_v15 = vpop.f32.mrf.mxu1  ;;  %v2445_v13 = vor.u32 %v2694_v11, %v2444_v10 }
 0x3e2   :  { %v1262_v16 = vpack.c.bf16 %v1258_v14, %v1258_v14  ;;  %1765 = vmatpush.bf16.msrb.mxu0 %v2445_v13 }
 0x3e3   :  { %v1212_v17 = vpop.f32.mrf.mxu2 }
 0x3e4   :  { %v1226_v18 = vadd.f32 %v1225_v12, %v1212_v17  ;;  %1566 = vmatmul.bf16.vlgmr.msra.gmra.mxu1 %v1262_v16  ;;  %v2441_v12 = vor.u32 %v2692_v7, %v2438_v9 }
 0x3e5   :  { %v1240_v19 = vpop.f32.mrf.mxu0 }
 0x3e6   :  { %v1257_v20 = vmax.f32 %v1226_v18, 0.0  ;;  %v1227_v21 = vpop.f32.mrf.mxu3  ;;  %1752 = vmatpush.bf16.msrb.mxu3 %v2441_v12 }
 0x3e8   :  { %v1261_v22 = vpack.c.bf16 %v1257_v20, %v1257_v20 }
 0x3ea   :  { %1553 = vmatmul.bf16.vlgmr.msra.gmra.mxu0 %v1261_v22 }
 0x3eb   :  { %v1214_v23 = vpop.f32.mrf.mxu2 }
 0x457   :  { %v1541_v14 = vpop.f32.mrf.mxu3 }
 0x45d   :  { %v1528_v15 = vpop.f32.mrf.mxu2 }
 0x45e   :  { %v1542_v19 = vadd.f32 %v1541_v14, %v1528_v15 }
 0x45f   :  { %v1543_v16 = vpop.f32.mrf.mxu3 }
 0x461   :  { %v1567_v17 = vpop.f32.mrf.mxu1 }
 0x465   :  { %v1530_v18 = vpop.f32.mrf.mxu2 }
 0x467   :  { %v1554_v20 = vpop.f32.mrf.mxu0 }
 0x468   :  { %v1555_v21 = vadd.f32 %v1554_v20, %v1542_v19 }
 0x469   :  { %v1569_v22 = vpop.f32.mrf.mxu1 }
 0x46a   :  { %v1568_v23 = vadd.f32 %v1567_v17, %v1555_v21 }
 0x46c   :  { %v1571_v24 = vpack.c.bf16 %v1568_v23, %v1568_v23 }
 0x46e   :  { %1740 = vmatmul.bf16.vlgmr.msrb.gmra.mxu2 %v1571_v24  ;;  %1753 = vmatmul.bf16.vlgmr.msrb.gmra.mxu3 %v1571_v24 }
 0x46f   :  { %1766 = vmatmul.bf16.vlgmr.msrb.gmra.mxu0 %v1571_v24  ;;  %v1556_v25 = vpop.f32.mrf.mxu0 }
 0x4ec   :  { %v1767_v26 = vpop.f32.mrf.mxu0 }
 0x4ed   :  { %1773 = vst [vmem:[%s3103_s10 + $0x10] sm:$0xff] %v1767_v26 }
 0x4f1   :  { %v1741_v27 = vpop.f32.mrf.mxu2  ;;  %v1754_v28 = vpop.f32.mrf.mxu3 }
 0x4f2   :  { %1771 = vst [vmem:[%s3103_s10] sm:$0xff] %v1741_v27 }
 0x4f3   :  { %1772 = vst [vmem:[%s3103_s10 + $0x8] sm:$0xff] %v1754_v28 }
 0x4f4   :  { %v1769_v29 = vpop.f32.mrf.mxu0 }
 0x4f9   :  { %v1743_v30 = vpop.f32.mrf.mxu2  ;;  %v1756_v31 = vpop.f32.mrf.mxu3 }
 0x4fa   :  { %1778 = vsyncpa [#allocation3], 1 }
 0x4fb   :  { %1779 = vsyncpa [#allocation5], 1 }
 0x4fc   :  { %1780 = vsyncpa [#allocation8], 1 }
 0x4fd   :  { %1781 = vsyncpa [#allocation11], 1 }
 0x4fe   :  { %1782 = vsyncpa [#allocation14], 1 }

</bundles_post_ra>
